<compile_context>
chip_gen: v7x
topology: tpu7x:2x2x1
jax: 0.10.0
libtpu: 0.0.40
codegen_flags: <defaults>
</compile_context>

<pallas_src>
import math

import numpy as np
import jax
import jax.numpy as jnp
from jax.experimental import pallas as pl
from jax.experimental.pallas import tpu as pltpu

BN_EPS = 1e-5
STRIDE = 3  # stride of the very first 3x3 conv, as in the PyTorch module


# ----------------------------- activations -----------------------------------
def _hardswish(x):
    return x * jnp.clip(x + 3.0, 0.0, 6.0) * (1.0 / 6.0)


def _hardsigmoid(x):
    return jnp.clip(x + 3.0, 0.0, 6.0) * (1.0 / 6.0)


def _relu(x):
    return jnp.maximum(x, 0.0)


_ACTS = {"hs": _hardswish, "re": _relu}


# ----------------------------- constant matrices ------------------------------
def build_shift_mats(k, H, W):
    """0/1 matrices S[t] with S[t] @ x_flat == x shifted by tap t (zero padded)."""
    M = H * W
    p = (k - 1) // 2
    S = np.zeros((k * k, M, M), np.float32)
    for kh in range(k):
        for kw in range(k):
            t = kh * k + kw
            dh, dw = kh - p, kw - p
            for i in range(H):
                for j in range(W):
                    ii, jj = i + dh, j + dw
                    if 0 <= ii < H and 0 <= jj < W:
                        S[t, i * W + j, ii * W + jj] = 1.0
    return S


def build_pool_mat(time, H, W):
    """adaptive_avg_pool2d((time, 1)) over an (H, W) map, as a (time, H*W) matrix."""
    M = H * W
    Q = np.zeros((time, M), np.float32)
    for ti in range(time):
        sh = (ti * H) // time
        eh = math.ceil((ti + 1) * H / time)
        cnt = (eh - sh) * W
        for i in range(sh, eh):
            Q[ti, i * W:(i + 1) * W] = 1.0 / cnt
    return Q


# ----------------------------- fused kernel -----------------------------------
def build_kernel(cfgs, M):
    """Build the fused forward kernel.  `cfgs` is static python config."""

    def kernel(*refs):
        it = iter(refs[:-1])
        out_ref = refs[-1]

        # ---- first ConvBNActivation (3x3, stride 3, pad 1, Hardswish) as matmul
        patches = next(it)[0].astype(jnp.bfloat16)                    # (M, 9)
        fw = next(it)[...]                                            # (9, c0) bf16
        fb = next(it)[...]                                            # (1, c0) f32
        x = _hardswish(jnp.dot(patches, fw,
                               preferred_element_type=jnp.float32) + fb)

        # ---- inverted residual blocks (all intermediates stay on-chip) ----
        for cfg in cfgs:
            act = _ACTS[cfg["act"]]
            ec, k = cfg["ec"], cfg["k"]
            inp = x
            if cfg["has_expand"]:
                ew = next(it)[...]
                eb = next(it)[...]
                x = act(jnp.dot(x.astype(jnp.bfloat16), ew,
                                preferred_element_type=jnp.float32) + eb)

            # depthwise kxk conv (stride 1) as k*k shift-matrix matmuls
            shift_ref = next(it)                                      # (k*k, M, M) bf16
            dww = next(it)[...]                                       # (k*k, ec) f32 (BN folded)
            dwb = next(it)[...]                                       # (1, ec) f32
            xb = x.astype(jnp.bfloat16)
            acc = jnp.zeros((M, ec), jnp.float32)
            for t in range(k * k):
                shifted = jnp.dot(shift_ref[t], xb,
                                  preferred_element_type=jnp.float32)  # (M, ec)
                acc = acc + shifted * dww[t:t + 1, :]
            x = act(acc + dwb)

            if cfg["has_se"]:
                w1 = next(it)[...]
                b1 = next(it)[...]
                w2 = next(it)[...]
                b2 = next(it)[...]
                m = jnp.mean(x, axis=0, keepdims=True)                 # (1, ec) global avg pool
                h = jnp.maximum(
                    jnp.dot(m.astype(jnp.bfloat16), w1,
                            preferred_element_type=jnp.float32) + b1, 0.0)
                s = _hardsigmoid(
                    jnp.dot(h.astype(jnp.bfloat16), w2,
                            preferred_element_type=jnp.float32) + b2)
                x = x * s

            pw = next(it)[...]
            pb = next(it)[...]
            x = jnp.dot(x.astype(jnp.bfloat16), pw,
                        preferred_element_type=jnp.float32) + pb        # Identity act
            if cfg["use_res"]:
                x = x + inp

        # ---- last ConvBNActivation (1x1, Hardswish) ----
        lw = next(it)[...]
        lb = next(it)[...]
        x = _hardswish(jnp.dot(x.astype(jnp.bfloat16), lw,
                               preferred_element_type=jnp.float32) + lb)

        # ---- adaptive_avg_pool2d((time, 1)) + squeeze + transpose as one matmul
        Q = next(it)[...]                                              # (time, M) f32
        out_ref[0] = jnp.dot(Q, x, preferred_element_type=jnp.float32)

    return kernel


def _const_spec(shape):
    nd = len(shape)
    return pl.BlockSpec(shape, lambda n, _nd=nd: (0,) * _nd)


# ----------------------------- forward builder ---------------------------------
def make_forward(cfgs, H, W, out_dim):
    """Returns forward(params, x_nchw) -> (N, time, out_dim).  cfgs is static."""
    k0, s0, p0 = 3, STRIDE, 1
    Ho = (H + 2 * p0 - k0) // s0 + 1
    Wo = (W + 2 * p0 - k0) // s0 + 1
    M = Ho * Wo
    time = H

    Q = jnp.asarray(build_pool_mat(time, Ho, Wo), jnp.float32)
    shift_mats = {k: jnp.asarray(build_shift_mats(k, Ho, Wo), jnp.bfloat16)
                  for k in sorted({c["k"] for c in cfgs})}
    kernel = build_kernel(cfgs, M)

    def forward(params, x_nchw):
        N = x_nchw.shape[0]
        assert x_nchw.shape[2] == H and x_nchw.shape[3] == W
        x = x_nchw[:, 0, :, :].astype(jnp.float32)                    # (N, H, W), 1 in-channel
        # im2col for the stride-3 first conv (cheap one-shot XLA glue feeding the
        # single fused kernel; everything downstream stays in VMEM).
        xp = jnp.pad(x, ((0, 0), (p0, p0), (p0, p0)))
        cols = []
        for kh in range(k0):
            for kw in range(k0):
                cols.append(xp[:, kh:kh + (Ho - 1) * s0 + 1:s0,
                               kw:kw + (Wo - 1) * s0 + 1:s0])
        patches = jnp.stack(cols, axis=-1).reshape(N, M, k0 * k0)

        inputs = [patches, params["first"]["w"], params["first"]["b"]]
        for cfg, bp in zip(cfgs, params["blocks"]):
            if cfg["has_expand"]:
                inputs += [bp["expand"]["w"], bp["expand"]["b"]]
            inputs += [shift_mats[cfg["k"]], bp["dw"]["w"], bp["dw"]["b"]]
            if cfg["has_se"]:
                inputs += [bp["se"]["w1"], bp["se"]["b1"],
                           bp["se"]["w2"], bp["se"]["b2"]]
            inputs += [bp["project"]["w"], bp["project"]["b"]]
        inputs += [params["last"]["w"], params["last"]["b"], Q]

        in_specs = [pl.BlockSpec((1, M, k0 * k0), lambda n: (n, 0, 0))]
        in_specs += [_const_spec(a.shape) for a in inputs[1:]]

        return pl.pallas_call(
            kernel,
            grid=(N,),
            in_specs=in_specs,
            out_specs=pl.BlockSpec((1, time, out_dim), lambda n: (n, 0, 0)),
            out_shape=jax.ShapeDtypeStruct((N, time, out_dim), jnp.float32),
            compiler_params=pltpu.CompilerParams(
                dimension_semantics=("parallel",)),
        )(*inputs)

    return forward


# ----------------------------- parameters --------------------------------------
def _make_divisible(v, divisor=8, min_value=None):
    if min_value is None:
        min_value = divisor
    new_v = max(min_value, int(v + divisor / 2) // divisor * divisor)
    if new_v < 0.9 * v:
        new_v += divisor
    return new_v


def _bn_fold(c):
    gamma = np.ones((c,), np.float32)
    beta = np.zeros((c,), np.float32)
    mean = np.zeros((c,), np.float32)
    var = np.ones((c,), np.float32)
    scale = gamma / np.sqrt(var + BN_EPS)
    bias = beta - mean * scale
    return scale, bias


def build_configs(bneck_confs):
    """Static (python-only) per-block configuration — closed over, never traced."""
    cfgs = []
    for (ic, k, ec, oc, use_se, act, stride, dil) in bneck_confs:
        # TODO(synk): strided / dilated depthwise in bneck blocks not implemented.
        assert stride == 1 and dil == 1, "only stride=1, dilation=1 bnecks supported"
        ic, ec, oc = _make_divisible(ic), _make_divisible(ec), _make_divisible(oc)
        cfgs.append(dict(ic=ic, k=k, ec=ec, oc=oc,
                         has_expand=(ec != ic), has_se=bool(use_se),
                         act="hs" if act == "HS" else "re",
                         use_res=(stride == 1 and ic == oc)))
    return cfgs


def init_params(key, cfgs, output_dim):
    """Array-only pytree (weights in bf16, biases f32, BN folded into weights)."""
    keys = iter(jax.random.split(key, 64))

    def kaiming(shape, fan_out):
        # nn.init.kaiming_normal_(mode='fan_out'): std = sqrt(2 / fan_out)
        return jax.random.normal(next(keys), shape, jnp.float32) * np.sqrt(2.0 / fan_out)

    def conv_bn(shape_in_out, fan_out, cout, dtype=jnp.bfloat16):
        w = kaiming(shape_in_out, fan_out)
        scale, bias = _bn_fold(cout)
        return (w * scale).astype(dtype), jnp.asarray(bias.reshape(1, cout), jnp.float32)

    params = {}
    c0 = cfgs[0]["ic"]
    # first ConvBNActivation(1, c0, k=3, stride=STRIDE): weight laid out (k*k, c0)
    fw, fb = conv_bn((9, c0), c0 * 9, c0)
    params["first"] = dict(w=fw, b=fb)

    blocks = []
    for cfg in cfgs:
        ic, ec, oc, k = cfg["ic"], cfg["ec"], cfg["oc"], cfg["k"]
        bp = {}
        if cfg["has_expand"]:
            ew, eb = conv_bn((ic, ec), ec, ec)
            bp["expand"] = dict(w=ew, b=eb)
        # depthwise kxk conv (groups=ec), torch weight (ec,1,k,k) -> fan_out=ec*k*k
        dw, db = conv_bn((k * k, ec), ec * k * k, ec, dtype=jnp.float32)
        bp["dw"] = dict(w=dw, b=db)
        if cfg["has_se"]:
            csq = _make_divisible(ec // 4)
            bp["se"] = dict(
                w1=kaiming((ec, csq), csq).astype(jnp.bfloat16),
                b1=jnp.zeros((1, csq), jnp.float32),
                w2=kaiming((csq, ec), ec).astype(jnp.bfloat16),
                b2=jnp.zeros((1, ec), jnp.float32))
        pw, pb = conv_bn((ec, oc), oc, oc)
        bp["project"] = dict(w=pw, b=pb)
        blocks.append(bp)
    params["blocks"] = blocks

    lw, lb = conv_bn((cfgs[-1]["oc"], output_dim), output_dim, output_dim)
    params["last"] = dict(w=lw, b=lb)
    return params


# ----------------------------- main ---------------------------------------------
if __name__ == "__main__":
    key = jax.random.PRNGKey(0)
    k_param, k_x = jax.random.split(key)

    # bneck_confs: (input_c, kernel, expanded_c, out_c, use_se, activation, stride, dilation)
    bneck_confs = [
        (8, 3, 8, 8, True, "RE", 1, 1),
        (8, 3, 16, 16, True, "HS", 1, 1),
    ]
    output_dim = 32
    N, H, W = 2, 16, 16

    cfgs = build_configs(bneck_confs)
    params = init_params(k_param, cfgs, output_dim)
    x = jax.random.normal(k_x, (N, 1, H, W), jnp.float32)   # NCHW, 1 input channel

    fwd = jax.jit(make_forward(cfgs, H, W, output_dim))
    out = jax.block_until_ready(fwd(params, x))

    assert out.shape == (N, H, output_dim), out.shape
    assert bool(jnp.all(jnp.isfinite(out)))
    print("KERNEL_OK")
</pallas_src>

<mosaic_0001>
module attributes {stable_mosaic.version = 11 : i64} {
  func.func @kernel(%arg0: i32, %arg1: memref<1x36x9xf32, #tpu.memory_space<vmem>>, %arg2: memref<9x8xbf16, #tpu.memory_space<vmem>>, %arg3: memref<1x8xf32, #tpu.memory_space<vmem>>, %arg4: memref<9x36x36xbf16, #tpu.memory_space<vmem>>, %arg5: memref<9x8xf32, #tpu.memory_space<vmem>>, %arg6: memref<1x8xf32, #tpu.memory_space<vmem>>, %arg7: memref<8x8xbf16, #tpu.memory_space<vmem>>, %arg8: memref<1x8xf32, #tpu.memory_space<vmem>>, %arg9: memref<8x8xbf16, #tpu.memory_space<vmem>>, %arg10: memref<1x8xf32, #tpu.memory_space<vmem>>, %arg11: memref<8x8xbf16, #tpu.memory_space<vmem>>, %arg12: memref<1x8xf32, #tpu.memory_space<vmem>>, %arg13: memref<8x16xbf16, #tpu.memory_space<vmem>>, %arg14: memref<1x16xf32, #tpu.memory_space<vmem>>, %arg15: memref<9x36x36xbf16, #tpu.memory_space<vmem>>, %arg16: memref<9x16xf32, #tpu.memory_space<vmem>>, %arg17: memref<1x16xf32, #tpu.memory_space<vmem>>, %arg18: memref<16x8xbf16, #tpu.memory_space<vmem>>, %arg19: memref<1x8xf32, #tpu.memory_space<vmem>>, %arg20: memref<8x16xbf16, #tpu.memory_space<vmem>>, %arg21: memref<1x16xf32, #tpu.memory_space<vmem>>, %arg22: memref<16x16xbf16, #tpu.memory_space<vmem>>, %arg23: memref<1x16xf32, #tpu.memory_space<vmem>>, %arg24: memref<16x32xbf16, #tpu.memory_space<vmem>>, %arg25: memref<1x32xf32, #tpu.memory_space<vmem>>, %arg26: memref<16x36xf32, #tpu.memory_space<vmem>>, %arg27: memref<1x16x32xf32, #tpu.memory_space<vmem>>) attributes {dimension_semantics = [#tpu.dimension_semantics<parallel>], iteration_bounds = array<i64: 2>, scalar_prefetch = 0 : i64, scratch_operands = 0 : i64, tpu.core_type = #tpu.core_type<tc>, window_params = [{transform_indices = @transform_0, window_bounds = array<i64: 1, 36, 9>}, {pipeline_mode = #tpu.pipeline_mode<synchronous>, transform_indices = @transform_1, window_bounds = array<i64: 9, 8>}, {pipeline_mode = #tpu.pipeline_mode<synchronous>, transform_indices = @transform_2, window_bounds = array<i64: 1, 8>}, {pipeline_mode = #tpu.pipeline_mode<synchronous>, transform_indices = @transform_3, window_bounds = array<i64: 9, 36, 36>}, {pipeline_mode = #tpu.pipeline_mode<synchronous>, transform_indices = @transform_4, window_bounds = array<i64: 9, 8>}, {pipeline_mode = #tpu.pipeline_mode<synchronous>, transform_indices = @transform_5, window_bounds = array<i64: 1, 8>}, {pipeline_mode = #tpu.pipeline_mode<synchronous>, transform_indices = @transform_6, window_bounds = array<i64: 8, 8>}, {pipeline_mode = #tpu.pipeline_mode<synchronous>, transform_indices = @transform_7, window_bounds = array<i64: 1, 8>}, {pipeline_mode = #tpu.pipeline_mode<synchronous>, transform_indices = @transform_8, window_bounds = array<i64: 8, 8>}, {pipeline_mode = #tpu.pipeline_mode<synchronous>, transform_indices = @transform_9, window_bounds = array<i64: 1, 8>}, {pipeline_mode = #tpu.pipeline_mode<synchronous>, transform_indices = @transform_10, window_bounds = array<i64: 8, 8>}, {pipeline_mode = #tpu.pipeline_mode<synchronous>, transform_indices = @transform_11, window_bounds = array<i64: 1, 8>}, {pipeline_mode = #tpu.pipeline_mode<synchronous>, transform_indices = @transform_12, window_bounds = array<i64: 8, 16>}, {pipeline_mode = #tpu.pipeline_mode<synchronous>, transform_indices = @transform_13, window_bounds = array<i64: 1, 16>}, {pipeline_mode = #tpu.pipeline_mode<synchronous>, transform_indices = @transform_14, window_bounds = array<i64: 9, 36, 36>}, {pipeline_mode = #tpu.pipeline_mode<synchronous>, transform_indices = @transform_15, window_bounds = array<i64: 9, 16>}, {pipeline_mode = #tpu.pipeline_mode<synchronous>, transform_indices = @transform_16, window_bounds = array<i64: 1, 16>}, {pipeline_mode = #tpu.pipeline_mode<synchronous>, transform_indices = @transform_17, window_bounds = array<i64: 16, 8>}, {pipeline_mode = #tpu.pipeline_mode<synchronous>, transform_indices = @transform_18, window_bounds = array<i64: 1, 8>}, {pipeline_mode = #tpu.pipeline_mode<synchronous>, transform_indices = @transform_19, window_bounds = array<i64: 8, 16>}, {pipeline_mode = #tpu.pipeline_mode<synchronous>, transform_indices = @transform_20, window_bounds = array<i64: 1, 16>}, {pipeline_mode = #tpu.pipeline_mode<synchronous>, transform_indices = @transform_21, window_bounds = array<i64: 16, 16>}, {pipeline_mode = #tpu.pipeline_mode<synchronous>, transform_indices = @transform_22, window_bounds = array<i64: 1, 16>}, {pipeline_mode = #tpu.pipeline_mode<synchronous>, transform_indices = @transform_23, window_bounds = array<i64: 16, 32>}, {pipeline_mode = #tpu.pipeline_mode<synchronous>, transform_indices = @transform_24, window_bounds = array<i64: 1, 32>}, {pipeline_mode = #tpu.pipeline_mode<synchronous>, transform_indices = @transform_25, window_bounds = array<i64: 16, 36>}, {transform_indices = @transform_26, window_bounds = array<i64: 1, 16, 32>}]} {
    %c0 = arith.constant 0 : index
    %c0_0 = arith.constant 0 : index
    %c0_1 = arith.constant 0 : index
    %0 = vector.load %arg1[%c0, %c0_0, %c0_1] : memref<1x36x9xf32, #tpu.memory_space<vmem>>, vector<1x36x9xf32>
    %1 = vector.shape_cast %0 : vector<1x36x9xf32> to vector<36x9xf32>
    %2 = arith.truncf %1 : vector<36x9xf32> to vector<36x9xbf16>
    %c0_2 = arith.constant 0 : index
    %c0_3 = arith.constant 0 : index
    %3 = vector.load %arg2[%c0_2, %c0_3] : memref<9x8xbf16, #tpu.memory_space<vmem>>, vector<9x8xbf16>
    %c0_4 = arith.constant 0 : index
    %c0_5 = arith.constant 0 : index
    %4 = vector.load %arg3[%c0_4, %c0_5] : memref<1x8xf32, #tpu.memory_space<vmem>>, vector<1x8xf32>
    %cst = arith.constant dense<0.000000e+00> : vector<36x8xf32>
    %5 = tpu.matmul %2, %3, %cst {dimension_numbers = #tpu.dot_dimension_numbers<[1], [0], [0], [1], [0, 0, 1, 1], [], []>} : vector<36x9xbf16>, vector<9x8xbf16>, vector<36x8xf32> -> vector<36x8xf32>
    %6 = vector.broadcast %4 : vector<1x8xf32> to vector<36x8xf32>
    %7 = arith.addf %5, %6 : vector<36x8xf32>
    %cst_6 = arith.constant 3.000000e+00 : f32
    %8 = vector.broadcast %cst_6 : f32 to vector<36x8xf32>
    %9 = arith.addf %7, %8 : vector<36x8xf32>
    %cst_7 = arith.constant 0.000000e+00 : f32
    %cst_8 = arith.constant 6.000000e+00 : f32
    %10 = vector.broadcast %cst_7 : f32 to vector<36x8xf32>
    %11 = arith.maximumf %10, %9 : vector<36x8xf32>
    %12 = vector.broadcast %cst_8 : f32 to vector<36x8xf32>
    %13 = arith.minimumf %12, %11 : vector<36x8xf32>
    %14 = arith.mulf %7, %13 : vector<36x8xf32>
    %cst_9 = arith.constant 0.166666672 : f32
    %15 = vector.broadcast %cst_9 : f32 to vector<36x8xf32>
    %16 = arith.mulf %14, %15 : vector<36x8xf32>
    %c0_10 = arith.constant 0 : index
    %c0_11 = arith.constant 0 : index
    %17 = vector.load %arg5[%c0_10, %c0_11] : memref<9x8xf32, #tpu.memory_space<vmem>>, vector<9x8xf32>
    %c0_12 = arith.constant 0 : index
    %c0_13 = arith.constant 0 : index
    %18 = vector.load %arg6[%c0_12, %c0_13] : memref<1x8xf32, #tpu.memory_space<vmem>>, vector<1x8xf32>
    %19 = arith.truncf %16 : vector<36x8xf32> to vector<36x8xbf16>
    %cst_14 = arith.constant 0.000000e+00 : f32
    %20 = vector.broadcast %cst_14 : f32 to vector<36x8xf32>
    %c0_15 = arith.constant 0 : index
    %c0_16 = arith.constant 0 : index
    %c0_17 = arith.constant 0 : index
    %21 = vector.load %arg4[%c0_15, %c0_16, %c0_17] : memref<9x36x36xbf16, #tpu.memory_space<vmem>>, vector<1x36x36xbf16>
    %22 = vector.shape_cast %21 : vector<1x36x36xbf16> to vector<36x36xbf16>
    %cst_18 = arith.constant dense<0.000000e+00> : vector<36x8xf32>
    %23 = tpu.matmul %22, %19, %cst_18 {dimension_numbers = #tpu.dot_dimension_numbers<[1], [0], [0], [1], [0, 0, 1, 1], [], []>} : vector<36x36xbf16>, vector<36x8xbf16>, vector<36x8xf32> -> vector<36x8xf32>
    %24 = vector.extract_strided_slice %17 {offsets = [0, 0], sizes = [1, 8], strides = [1, 1]} : vector<9x8xf32> to vector<1x8xf32>
    %25 = vector.broadcast %24 : vector<1x8xf32> to vector<36x8xf32>
    %26 = arith.mulf %23, %25 : vector<36x8xf32>
    %27 = arith.addf %20, %26 : vector<36x8xf32>
    %c1 = arith.constant 1 : index
    %c0_19 = arith.constant 0 : index
    %c0_20 = arith.constant 0 : index
    %28 = vector.load %arg4[%c1, %c0_19, %c0_20] : memref<9x36x36xbf16, #tpu.memory_space<vmem>>, vector<1x36x36xbf16>
    %29 = vector.shape_cast %28 : vector<1x36x36xbf16> to vector<36x36xbf16>
    %cst_21 = arith.constant dense<0.000000e+00> : vector<36x8xf32>
    %30 = tpu.matmul %29, %19, %cst_21 {dimension_numbers = #tpu.dot_dimension_numbers<[1], [0], [0], [1], [0, 0, 1, 1], [], []>} : vector<36x36xbf16>, vector<36x8xbf16>, vector<36x8xf32> -> vector<36x8xf32>
    %31 = vector.extract_strided_slice %17 {offsets = [1, 0], sizes = [1, 8], strides = [1, 1]} : vector<9x8xf32> to vector<1x8xf32>
    %32 = vector.broadcast %31 : vector<1x8xf32> to vector<36x8xf32>
    %33 = arith.mulf %30, %32 : vector<36x8xf32>
    %34 = arith.addf %27, %33 : vector<36x8xf32>
    %c2 = arith.constant 2 : index
    %c0_22 = arith.constant 0 : index
    %c0_23 = arith.constant 0 : index
    %35 = vector.load %arg4[%c2, %c0_22, %c0_23] : memref<9x36x36xbf16, #tpu.memory_space<vmem>>, vector<1x36x36xbf16>
    %36 = vector.shape_cast %35 : vector<1x36x36xbf16> to vector<36x36xbf16>
    %cst_24 = arith.constant dense<0.000000e+00> : vector<36x8xf32>
    %37 = tpu.matmul %36, %19, %cst_24 {dimension_numbers = #tpu.dot_dimension_numbers<[1], [0], [0], [1], [0, 0, 1, 1], [], []>} : vector<36x36xbf16>, vector<36x8xbf16>, vector<36x8xf32> -> vector<36x8xf32>
    %38 = vector.extract_strided_slice %17 {offsets = [2, 0], sizes = [1, 8], strides = [1, 1]} : vector<9x8xf32> to vector<1x8xf32>
    %39 = vector.broadcast %38 : vector<1x8xf32> to vector<36x8xf32>
    %40 = arith.mulf %37, %39 : vector<36x8xf32>
    %41 = arith.addf %34, %40 : vector<36x8xf32>
    %c3 = arith.constant 3 : index
    %c0_25 = arith.constant 0 : index
    %c0_26 = arith.constant 0 : index
    %42 = vector.load %arg4[%c3, %c0_25, %c0_26] : memref<9x36x36xbf16, #tpu.memory_space<vmem>>, vector<1x36x36xbf16>
    %43 = vector.shape_cast %42 : vector<1x36x36xbf16> to vector<36x36xbf16>
    %cst_27 = arith.constant dense<0.000000e+00> : vector<36x8xf32>
    %44 = tpu.matmul %43, %19, %cst_27 {dimension_numbers = #tpu.dot_dimension_numbers<[1], [0], [0], [1], [0, 0, 1, 1], [], []>} : vector<36x36xbf16>, vector<36x8xbf16>, vector<36x8xf32> -> vector<36x8xf32>
    %45 = vector.extract_strided_slice %17 {offsets = [3, 0], sizes = [1, 8], strides = [1, 1]} : vector<9x8xf32> to vector<1x8xf32>
    %46 = vector.broadcast %45 : vector<1x8xf32> to vector<36x8xf32>
    %47 = arith.mulf %44, %46 : vector<36x8xf32>
    %48 = arith.addf %41, %47 : vector<36x8xf32>
    %c4 = arith.constant 4 : index
    %c0_28 = arith.constant 0 : index
    %c0_29 = arith.constant 0 : index
    %49 = vector.load %arg4[%c4, %c0_28, %c0_29] : memref<9x36x36xbf16, #tpu.memory_space<vmem>>, vector<1x36x36xbf16>
    %50 = vector.shape_cast %49 : vector<1x36x36xbf16> to vector<36x36xbf16>
    %cst_30 = arith.constant dense<0.000000e+00> : vector<36x8xf32>
    %51 = tpu.matmul %50, %19, %cst_30 {dimension_numbers = #tpu.dot_dimension_numbers<[1], [0], [0], [1], [0, 0, 1, 1], [], []>} : vector<36x36xbf16>, vector<36x8xbf16>, vector<36x8xf32> -> vector<36x8xf32>
    %52 = vector.extract_strided_slice %17 {offsets = [4, 0], sizes = [1, 8], strides = [1, 1]} : vector<9x8xf32> to vector<1x8xf32>
    %53 = vector.broadcast %52 : vector<1x8xf32> to vector<36x8xf32>
    %54 = arith.mulf %51, %53 : vector<36x8xf32>
    %55 = arith.addf %48, %54 : vector<36x8xf32>
    %c5 = arith.constant 5 : index
    %c0_31 = arith.constant 0 : index
    %c0_32 = arith.constant 0 : index
    %56 = vector.load %arg4[%c5, %c0_31, %c0_32] : memref<9x36x36xbf16, #tpu.memory_space<vmem>>, vector<1x36x36xbf16>
    %57 = vector.shape_cast %56 : vector<1x36x36xbf16> to vector<36x36xbf16>
    %cst_33 = arith.constant dense<0.000000e+00> : vector<36x8xf32>
    %58 = tpu.matmul %57, %19, %cst_33 {dimension_numbers = #tpu.dot_dimension_numbers<[1], [0], [0], [1], [0, 0, 1, 1], [], []>} : vector<36x36xbf16>, vector<36x8xbf16>, vector<36x8xf32> -> vector<36x8xf32>
    %59 = vector.extract_strided_slice %17 {offsets = [5, 0], sizes = [1, 8], strides = [1, 1]} : vector<9x8xf32> to vector<1x8xf32>
    %60 = vector.broadcast %59 : vector<1x8xf32> to vector<36x8xf32>
    %61 = arith.mulf %58, %60 : vector<36x8xf32>
    %62 = arith.addf %55, %61 : vector<36x8xf32>
    %c6 = arith.constant 6 : index
    %c0_34 = arith.constant 0 : index
    %c0_35 = arith.constant 0 : index
    %63 = vector.load %arg4[%c6, %c0_34, %c0_35] : memref<9x36x36xbf16, #tpu.memory_space<vmem>>, vector<1x36x36xbf16>
    %64 = vector.shape_cast %63 : vector<1x36x36xbf16> to vector<36x36xbf16>
    %cst_36 = arith.constant dense<0.000000e+00> : vector<36x8xf32>
    %65 = tpu.matmul %64, %19, %cst_36 {dimension_numbers = #tpu.dot_dimension_numbers<[1], [0], [0], [1], [0, 0, 1, 1], [], []>} : vector<36x36xbf16>, vector<36x8xbf16>, vector<36x8xf32> -> vector<36x8xf32>
    %66 = vector.extract_strided_slice %17 {offsets = [6, 0], sizes = [1, 8], strides = [1, 1]} : vector<9x8xf32> to vector<1x8xf32>
    %67 = vector.broadcast %66 : vector<1x8xf32> to vector<36x8xf32>
    %68 = arith.mulf %65, %67 : vector<36x8xf32>
    %69 = arith.addf %62, %68 : vector<36x8xf32>
    %c7 = arith.constant 7 : index
    %c0_37 = arith.constant 0 : index
    %c0_38 = arith.constant 0 : index
    %70 = vector.load %arg4[%c7, %c0_37, %c0_38] : memref<9x36x36xbf16, #tpu.memory_space<vmem>>, vector<1x36x36xbf16>
    %71 = vector.shape_cast %70 : vector<1x36x36xbf16> to vector<36x36xbf16>
    %cst_39 = arith.constant dense<0.000000e+00> : vector<36x8xf32>
    %72 = tpu.matmul %71, %19, %cst_39 {dimension_numbers = #tpu.dot_dimension_numbers<[1], [0], [0], [1], [0, 0, 1, 1], [], []>} : vector<36x36xbf16>, vector<36x8xbf16>, vector<36x8xf32> -> vector<36x8xf32>
    %73 = vector.extract_strided_slice %17 {offsets = [7, 0], sizes = [1, 8], strides = [1, 1]} : vector<9x8xf32> to vector<1x8xf32>
    %74 = vector.broadcast %73 : vector<1x8xf32> to vector<36x8xf32>
    %75 = arith.mulf %72, %74 : vector<36x8xf32>
    %76 = arith.addf %69, %75 : vector<36x8xf32>
    %c8 = arith.constant 8 : index
    %c0_40 = arith.constant 0 : index
    %c0_41 = arith.constant 0 : index
    %77 = vector.load %arg4[%c8, %c0_40, %c0_41] : memref<9x36x36xbf16, #tpu.memory_space<vmem>>, vector<1x36x36xbf16>
    %78 = vector.shape_cast %77 : vector<1x36x36xbf16> to vector<36x36xbf16>
    %cst_42 = arith.constant dense<0.000000e+00> : vector<36x8xf32>
    %79 = tpu.matmul %78, %19, %cst_42 {dimension_numbers = #tpu.dot_dimension_numbers<[1], [0], [0], [1], [0, 0, 1, 1], [], []>} : vector<36x36xbf16>, vector<36x8xbf16>, vector<36x8xf32> -> vector<36x8xf32>
    %80 = vector.extract_strided_slice %17 {offsets = [8, 0], sizes = [1, 8], strides = [1, 1]} : vector<9x8xf32> to vector<1x8xf32>
    %81 = vector.broadcast %80 : vector<1x8xf32> to vector<36x8xf32>
    %82 = arith.mulf %79, %81 : vector<36x8xf32>
    %83 = arith.addf %76, %82 : vector<36x8xf32>
    %84 = vector.broadcast %18 : vector<1x8xf32> to vector<36x8xf32>
    %85 = arith.addf %83, %84 : vector<36x8xf32>
    %cst_43 = arith.constant 0.000000e+00 : f32
    %86 = vector.broadcast %cst_43 : f32 to vector<36x8xf32>
    %87 = arith.maximumf %85, %86 : vector<36x8xf32>
    %c0_44 = arith.constant 0 : index
    %c0_45 = arith.constant 0 : index
    %88 = vector.load %arg7[%c0_44, %c0_45] : memref<8x8xbf16, #tpu.memory_space<vmem>>, vector<8x8xbf16>
    %c0_46 = arith.constant 0 : index
    %c0_47 = arith.constant 0 : index
    %89 = vector.load %arg8[%c0_46, %c0_47] : memref<1x8xf32, #tpu.memory_space<vmem>>, vector<1x8xf32>
    %c0_48 = arith.constant 0 : index
    %c0_49 = arith.constant 0 : index
    %90 = vector.load %arg9[%c0_48, %c0_49] : memref<8x8xbf16, #tpu.memory_space<vmem>>, vector<8x8xbf16>
    %c0_50 = arith.constant 0 : index
    %c0_51 = arith.constant 0 : index
    %91 = vector.load %arg10[%c0_50, %c0_51] : memref<1x8xf32, #tpu.memory_space<vmem>>, vector<1x8xf32>
    %cst_52 = arith.constant dense<0.000000e+00> : vector<8xf32>
    %92 = vector.multi_reduction <add>, %87, %cst_52 [0] : vector<36x8xf32> to vector<8xf32>
    %93 = vector.shape_cast %92 : vector<8xf32> to vector<1x8xf32>
    %cst_53 = arith.constant 3.600000e+01 : f32
    %94 = vector.broadcast %cst_53 : f32 to vector<1x8xf32>
    %95 = arith.divf %93, %94 : vector<1x8xf32>
    %96 = arith.truncf %95 : vector<1x8xf32> to vector<1x8xbf16>
    %cst_54 = arith.constant dense<0.000000e+00> : vector<1x8xf32>
    %97 = tpu.matmul %96, %88, %cst_54 {dimension_numbers = #tpu.dot_dimension_numbers<[1], [0], [0], [1], [0, 0, 1, 1], [], []>} : vector<1x8xbf16>, vector<8x8xbf16>, vector<1x8xf32> -> vector<1x8xf32>
    %98 = arith.addf %97, %89 : vector<1x8xf32>
    %cst_55 = arith.constant 0.000000e+00 : f32
    %99 = vector.broadcast %cst_55 : f32 to vector<1x8xf32>
    %100 = arith.maximumf %98, %99 : vector<1x8xf32>
    %101 = arith.truncf %100 : vector<1x8xf32> to vector<1x8xbf16>
    %cst_56 = arith.constant dense<0.000000e+00> : vector<1x8xf32>
    %102 = tpu.matmul %101, %90, %cst_56 {dimension_numbers = #tpu.dot_dimension_numbers<[1], [0], [0], [1], [0, 0, 1, 1], [], []>} : vector<1x8xbf16>, vector<8x8xbf16>, vector<1x8xf32> -> vector<1x8xf32>
    %103 = arith.addf %102, %91 : vector<1x8xf32>
    %cst_57 = arith.constant 3.000000e+00 : f32
    %104 = vector.broadcast %cst_57 : f32 to vector<1x8xf32>
    %105 = arith.addf %103, %104 : vector<1x8xf32>
    %cst_58 = arith.constant 0.000000e+00 : f32
    %cst_59 = arith.constant 6.000000e+00 : f32
    %106 = vector.broadcast %cst_58 : f32 to vector<1x8xf32>
    %107 = arith.maximumf %106, %105 : vector<1x8xf32>
    %108 = vector.broadcast %cst_59 : f32 to vector<1x8xf32>
    %109 = arith.minimumf %108, %107 : vector<1x8xf32>
    %cst_60 = arith.constant 0.166666672 : f32
    %110 = vector.broadcast %cst_60 : f32 to vector<1x8xf32>
    %111 = arith.mulf %109, %110 : vector<1x8xf32>
    %112 = vector.broadcast %111 : vector<1x8xf32> to vector<36x8xf32>
    %113 = arith.mulf %87, %112 : vector<36x8xf32>
    %c0_61 = arith.constant 0 : index
    %c0_62 = arith.constant 0 : index
    %114 = vector.load %arg11[%c0_61, %c0_62] : memref<8x8xbf16, #tpu.memory_space<vmem>>, vector<8x8xbf16>
    %c0_63 = arith.constant 0 : index
    %c0_64 = arith.constant 0 : index
    %115 = vector.load %arg12[%c0_63, %c0_64] : memref<1x8xf32, #tpu.memory_space<vmem>>, vector<1x8xf32>
    %116 = arith.truncf %113 : vector<36x8xf32> to vector<36x8xbf16>
    %cst_65 = arith.constant dense<0.000000e+00> : vector<36x8xf32>
    %117 = tpu.matmul %116, %114, %cst_65 {dimension_numbers = #tpu.dot_dimension_numbers<[1], [0], [0], [1], [0, 0, 1, 1], [], []>} : vector<36x8xbf16>, vector<8x8xbf16>, vector<36x8xf32> -> vector<36x8xf32>
    %118 = vector.broadcast %115 : vector<1x8xf32> to vector<36x8xf32>
    %119 = arith.addf %117, %118 : vector<36x8xf32>
    %120 = arith.addf %119, %16 : vector<36x8xf32>
    %c0_66 = arith.constant 0 : index
    %c0_67 = arith.constant 0 : index
    %121 = vector.load %arg13[%c0_66, %c0_67] : memref<8x16xbf16, #tpu.memory_space<vmem>>, vector<8x16xbf16>
    %c0_68 = arith.constant 0 : index
    %c0_69 = arith.constant 0 : index
    %122 = vector.load %arg14[%c0_68, %c0_69] : memref<1x16xf32, #tpu.memory_space<vmem>>, vector<1x16xf32>
    %123 = arith.truncf %120 : vector<36x8xf32> to vector<36x8xbf16>
    %cst_70 = arith.constant dense<0.000000e+00> : vector<36x16xf32>
    %124 = tpu.matmul %123, %121, %cst_70 {dimension_numbers = #tpu.dot_dimension_numbers<[1], [0], [0], [1], [0, 0, 1, 1], [], []>} : vector<36x8xbf16>, vector<8x16xbf16>, vector<36x16xf32> -> vector<36x16xf32>
    %125 = vector.broadcast %122 : vector<1x16xf32> to vector<36x16xf32>
    %126 = arith.addf %124, %125 : vector<36x16xf32>
    %cst_71 = arith.constant 3.000000e+00 : f32
    %127 = vector.broadcast %cst_71 : f32 to vector<36x16xf32>
    %128 = arith.addf %126, %127 : vector<36x16xf32>
    %cst_72 = arith.constant 0.000000e+00 : f32
    %cst_73 = arith.constant 6.000000e+00 : f32
    %129 = vector.broadcast %cst_72 : f32 to vector<36x16xf32>
    %130 = arith.maximumf %129, %128 : vector<36x16xf32>
    %131 = vector.broadcast %cst_73 : f32 to vector<36x16xf32>
    %132 = arith.minimumf %131, %130 : vector<36x16xf32>
    %133 = arith.mulf %126, %132 : vector<36x16xf32>
    %cst_74 = arith.constant 0.166666672 : f32
    %134 = vector.broadcast %cst_74 : f32 to vector<36x16xf32>
    %135 = arith.mulf %133, %134 : vector<36x16xf32>
    %c0_75 = arith.constant 0 : index
    %c0_76 = arith.constant 0 : index
    %136 = vector.load %arg16[%c0_75, %c0_76] : memref<9x16xf32, #tpu.memory_space<vmem>>, vector<9x16xf32>
    %c0_77 = arith.constant 0 : index
    %c0_78 = arith.constant 0 : index
    %137 = vector.load %arg17[%c0_77, %c0_78] : memref<1x16xf32, #tpu.memory_space<vmem>>, vector<1x16xf32>
    %138 = arith.truncf %135 : vector<36x16xf32> to vector<36x16xbf16>
    %cst_79 = arith.constant 0.000000e+00 : f32
    %139 = vector.broadcast %cst_79 : f32 to vector<36x16xf32>
    %c0_80 = arith.constant 0 : index
    %c0_81 = arith.constant 0 : index
    %c0_82 = arith.constant 0 : index
    %140 = vector.load %arg15[%c0_80, %c0_81, %c0_82] : memref<9x36x36xbf16, #tpu.memory_space<vmem>>, vector<1x36x36xbf16>
    %141 = vector.shape_cast %140 : vector<1x36x36xbf16> to vector<36x36xbf16>
    %cst_83 = arith.constant dense<0.000000e+00> : vector<36x16xf32>
    %142 = tpu.matmul %141, %138, %cst_83 {dimension_numbers = #tpu.dot_dimension_numbers<[1], [0], [0], [1], [0, 0, 1, 1], [], []>} : vector<36x36xbf16>, vector<36x16xbf16>, vector<36x16xf32> -> vector<36x16xf32>
    %143 = vector.extract_strided_slice %136 {offsets = [0, 0], sizes = [1, 16], strides = [1, 1]} : vector<9x16xf32> to vector<1x16xf32>
    %144 = vector.broadcast %143 : vector<1x16xf32> to vector<36x16xf32>
    %145 = arith.mulf %142, %144 : vector<36x16xf32>
    %146 = arith.addf %139, %145 : vector<36x16xf32>
    %c1_84 = arith.constant 1 : index
    %c0_85 = arith.constant 0 : index
    %c0_86 = arith.constant 0 : index
    %147 = vector.load %arg15[%c1_84, %c0_85, %c0_86] : memref<9x36x36xbf16, #tpu.memory_space<vmem>>, vector<1x36x36xbf16>
    %148 = vector.shape_cast %147 : vector<1x36x36xbf16> to vector<36x36xbf16>
    %cst_87 = arith.constant dense<0.000000e+00> : vector<36x16xf32>
    %149 = tpu.matmul %148, %138, %cst_87 {dimension_numbers = #tpu.dot_dimension_numbers<[1], [0], [0], [1], [0, 0, 1, 1], [], []>} : vector<36x36xbf16>, vector<36x16xbf16>, vector<36x16xf32> -> vector<36x16xf32>
    %150 = vector.extract_strided_slice %136 {offsets = [1, 0], sizes = [1, 16], strides = [1, 1]} : vector<9x16xf32> to vector<1x16xf32>
    %151 = vector.broadcast %150 : vector<1x16xf32> to vector<36x16xf32>
    %152 = arith.mulf %149, %151 : vector<36x16xf32>
    %153 = arith.addf %146, %152 : vector<36x16xf32>
    %c2_88 = arith.constant 2 : index
    %c0_89 = arith.constant 0 : index
    %c0_90 = arith.constant 0 : index
    %154 = vector.load %arg15[%c2_88, %c0_89, %c0_90] : memref<9x36x36xbf16, #tpu.memory_space<vmem>>, vector<1x36x36xbf16>
    %155 = vector.shape_cast %154 : vector<1x36x36xbf16> to vector<36x36xbf16>
    %cst_91 = arith.constant dense<0.000000e+00> : vector<36x16xf32>
    %156 = tpu.matmul %155, %138, %cst_91 {dimension_numbers = #tpu.dot_dimension_numbers<[1], [0], [0], [1], [0, 0, 1, 1], [], []>} : vector<36x36xbf16>, vector<36x16xbf16>, vector<36x16xf32> -> vector<36x16xf32>
    %157 = vector.extract_strided_slice %136 {offsets = [2, 0], sizes = [1, 16], strides = [1, 1]} : vector<9x16xf32> to vector<1x16xf32>
    %158 = vector.broadcast %157 : vector<1x16xf32> to vector<36x16xf32>
    %159 = arith.mulf %156, %158 : vector<36x16xf32>
    %160 = arith.addf %153, %159 : vector<36x16xf32>
    %c3_92 = arith.constant 3 : index
    %c0_93 = arith.constant 0 : index
    %c0_94 = arith.constant 0 : index
    %161 = vector.load %arg15[%c3_92, %c0_93, %c0_94] : memref<9x36x36xbf16, #tpu.memory_space<vmem>>, vector<1x36x36xbf16>
    %162 = vector.shape_cast %161 : vector<1x36x36xbf16> to vector<36x36xbf16>
    %cst_95 = arith.constant dense<0.000000e+00> : vector<36x16xf32>
    %163 = tpu.matmul %162, %138, %cst_95 {dimension_numbers = #tpu.dot_dimension_numbers<[1], [0], [0], [1], [0, 0, 1, 1], [], []>} : vector<36x36xbf16>, vector<36x16xbf16>, vector<36x16xf32> -> vector<36x16xf32>
    %164 = vector.extract_strided_slice %136 {offsets = [3, 0], sizes = [1, 16], strides = [1, 1]} : vector<9x16xf32> to vector<1x16xf32>
    %165 = vector.broadcast %164 : vector<1x16xf32> to vector<36x16xf32>
    %166 = arith.mulf %163, %165 : vector<36x16xf32>
    %167 = arith.addf %160, %166 : vector<36x16xf32>
    %c4_96 = arith.constant 4 : index
    %c0_97 = arith.constant 0 : index
    %c0_98 = arith.constant 0 : index
    %168 = vector.load %arg15[%c4_96, %c0_97, %c0_98] : memref<9x36x36xbf16, #tpu.memory_space<vmem>>, vector<1x36x36xbf16>
    %169 = vector.shape_cast %168 : vector<1x36x36xbf16> to vector<36x36xbf16>
    %cst_99 = arith.constant dense<0.000000e+00> : vector<36x16xf32>
    %170 = tpu.matmul %169, %138, %cst_99 {dimension_numbers = #tpu.dot_dimension_numbers<[1], [0], [0], [1], [0, 0, 1, 1], [], []>} : vector<36x36xbf16>, vector<36x16xbf16>, vector<36x16xf32> -> vector<36x16xf32>
    %171 = vector.extract_strided_slice %136 {offsets = [4, 0], sizes = [1, 16], strides = [1, 1]} : vector<9x16xf32> to vector<1x16xf32>
    %172 = vector.broadcast %171 : vector<1x16xf32> to vector<36x16xf32>
    %173 = arith.mulf %170, %172 : vector<36x16xf32>
    %174 = arith.addf %167, %173 : vector<36x16xf32>
    %c5_100 = arith.constant 5 : index
    %c0_101 = arith.constant 0 : index
    %c0_102 = arith.constant 0 : index
    %175 = vector.load %arg15[%c5_100, %c0_101, %c0_102] : memref<9x36x36xbf16, #tpu.memory_space<vmem>>, vector<1x36x36xbf16>
    %176 = vector.shape_cast %175 : vector<1x36x36xbf16> to vector<36x36xbf16>
    %cst_103 = arith.constant dense<0.000000e+00> : vector<36x16xf32>
    %177 = tpu.matmul %176, %138, %cst_103 {dimension_numbers = #tpu.dot_dimension_numbers<[1], [0], [0], [1], [0, 0, 1, 1], [], []>} : vector<36x36xbf16>, vector<36x16xbf16>, vector<36x16xf32> -> vector<36x16xf32>
    %178 = vector.extract_strided_slice %136 {offsets = [5, 0], sizes = [1, 16], strides = [1, 1]} : vector<9x16xf32> to vector<1x16xf32>
    %179 = vector.broadcast %178 : vector<1x16xf32> to vector<36x16xf32>
    %180 = arith.mulf %177, %179 : vector<36x16xf32>
    %181 = arith.addf %174, %180 : vector<36x16xf32>
    %c6_104 = arith.constant 6 : index
    %c0_105 = arith.constant 0 : index
    %c0_106 = arith.constant 0 : index
    %182 = vector.load %arg15[%c6_104, %c0_105, %c0_106] : memref<9x36x36xbf16, #tpu.memory_space<vmem>>, vector<1x36x36xbf16>
    %183 = vector.shape_cast %182 : vector<1x36x36xbf16> to vector<36x36xbf16>
    %cst_107 = arith.constant dense<0.000000e+00> : vector<36x16xf32>
    %184 = tpu.matmul %183, %138, %cst_107 {dimension_numbers = #tpu.dot_dimension_numbers<[1], [0], [0], [1], [0, 0, 1, 1], [], []>} : vector<36x36xbf16>, vector<36x16xbf16>, vector<36x16xf32> -> vector<36x16xf32>
    %185 = vector.extract_strided_slice %136 {offsets = [6, 0], sizes = [1, 16], strides = [1, 1]} : vector<9x16xf32> to vector<1x16xf32>
    %186 = vector.broadcast %185 : vector<1x16xf32> to vector<36x16xf32>
    %187 = arith.mulf %184, %186 : vector<36x16xf32>
    %188 = arith.addf %181, %187 : vector<36x16xf32>
    %c7_108 = arith.constant 7 : index
    %c0_109 = arith.constant 0 : index
    %c0_110 = arith.constant 0 : index
    %189 = vector.load %arg15[%c7_108, %c0_109, %c0_110] : memref<9x36x36xbf16, #tpu.memory_space<vmem>>, vector<1x36x36xbf16>
    %190 = vector.shape_cast %189 : vector<1x36x36xbf16> to vector<36x36xbf16>
    %cst_111 = arith.constant dense<0.000000e+00> : vector<36x16xf32>
    %191 = tpu.matmul %190, %138, %cst_111 {dimension_numbers = #tpu.dot_dimension_numbers<[1], [0], [0], [1], [0, 0, 1, 1], [], []>} : vector<36x36xbf16>, vector<36x16xbf16>, vector<36x16xf32> -> vector<36x16xf32>
    %192 = vector.extract_strided_slice %136 {offsets = [7, 0], sizes = [1, 16], strides = [1, 1]} : vector<9x16xf32> to vector<1x16xf32>
    %193 = vector.broadcast %192 : vector<1x16xf32> to vector<36x16xf32>
    %194 = arith.mulf %191, %193 : vector<36x16xf32>
    %195 = arith.addf %188, %194 : vector<36x16xf32>
    %c8_112 = arith.constant 8 : index
    %c0_113 = arith.constant 0 : index
    %c0_114 = arith.constant 0 : index
    %196 = vector.load %arg15[%c8_112, %c0_113, %c0_114] : memref<9x36x36xbf16, #tpu.memory_space<vmem>>, vector<1x36x36xbf16>
    %197 = vector.shape_cast %196 : vector<1x36x36xbf16> to vector<36x36xbf16>
    %cst_115 = arith.constant dense<0.000000e+00> : vector<36x16xf32>
    %198 = tpu.matmul %197, %138, %cst_115 {dimension_numbers = #tpu.dot_dimension_numbers<[1], [0], [0], [1], [0, 0, 1, 1], [], []>} : vector<36x36xbf16>, vector<36x16xbf16>, vector<36x16xf32> -> vector<36x16xf32>
    %199 = vector.extract_strided_slice %136 {offsets = [8, 0], sizes = [1, 16], strides = [1, 1]} : vector<9x16xf32> to vector<1x16xf32>
    %200 = vector.broadcast %199 : vector<1x16xf32> to vector<36x16xf32>
    %201 = arith.mulf %198, %200 : vector<36x16xf32>
    %202 = arith.addf %195, %201 : vector<36x16xf32>
    %203 = vector.broadcast %137 : vector<1x16xf32> to vector<36x16xf32>
    %204 = arith.addf %202, %203 : vector<36x16xf32>
    %cst_116 = arith.constant 3.000000e+00 : f32
    %205 = vector.broadcast %cst_116 : f32 to vector<36x16xf32>
    %206 = arith.addf %204, %205 : vector<36x16xf32>
    %cst_117 = arith.constant 0.000000e+00 : f32
    %cst_118 = arith.constant 6.000000e+00 : f32
    %207 = vector.broadcast %cst_117 : f32 to vector<36x16xf32>
    %208 = arith.maximumf %207, %206 : vector<36x16xf32>
    %209 = vector.broadcast %cst_118 : f32 to vector<36x16xf32>
    %210 = arith.minimumf %209, %208 : vector<36x16xf32>
    %211 = arith.mulf %204, %210 : vector<36x16xf32>
    %cst_119 = arith.constant 0.166666672 : f32
    %212 = vector.broadcast %cst_119 : f32 to vector<36x16xf32>
    %213 = arith.mulf %211, %212 : vector<36x16xf32>
    %c0_120 = arith.constant 0 : index
    %c0_121 = arith.constant 0 : index
    %214 = vector.load %arg18[%c0_120, %c0_121] : memref<16x8xbf16, #tpu.memory_space<vmem>>, vector<16x8xbf16>
    %c0_122 = arith.constant 0 : index
    %c0_123 = arith.constant 0 : index
    %215 = vector.load %arg19[%c0_122, %c0_123] : memref<1x8xf32, #tpu.memory_space<vmem>>, vector<1x8xf32>
    %c0_124 = arith.constant 0 : index
    %c0_125 = arith.constant 0 : index
    %216 = vector.load %arg20[%c0_124, %c0_125] : memref<8x16xbf16, #tpu.memory_space<vmem>>, vector<8x16xbf16>
    %c0_126 = arith.constant 0 : index
    %c0_127 = arith.constant 0 : index
    %217 = vector.load %arg21[%c0_126, %c0_127] : memref<1x16xf32, #tpu.memory_space<vmem>>, vector<1x16xf32>
    %cst_128 = arith.constant dense<0.000000e+00> : vector<16xf32>
    %218 = vector.multi_reduction <add>, %213, %cst_128 [0] : vector<36x16xf32> to vector<16xf32>
    %219 = vector.shape_cast %218 : vector<16xf32> to vector<1x16xf32>
    %cst_129 = arith.constant 3.600000e+01 : f32
    %220 = vector.broadcast %cst_129 : f32 to vector<1x16xf32>
    %221 = arith.divf %219, %220 : vector<1x16xf32>
    %222 = arith.truncf %221 : vector<1x16xf32> to vector<1x16xbf16>
    %cst_130 = arith.constant dense<0.000000e+00> : vector<1x8xf32>
    %223 = tpu.matmul %222, %214, %cst_130 {dimension_numbers = #tpu.dot_dimension_numbers<[1], [0], [0], [1], [0, 0, 1, 1], [], []>} : vector<1x16xbf16>, vector<16x8xbf16>, vector<1x8xf32> -> vector<1x8xf32>
    %224 = arith.addf %223, %215 : vector<1x8xf32>
    %cst_131 = arith.constant 0.000000e+00 : f32
    %225 = vector.broadcast %cst_131 : f32 to vector<1x8xf32>
    %226 = arith.maximumf %224, %225 : vector<1x8xf32>
    %227 = arith.truncf %226 : vector<1x8xf32> to vector<1x8xbf16>
    %cst_132 = arith.constant dense<0.000000e+00> : vector<1x16xf32>
    %228 = tpu.matmul %227, %216, %cst_132 {dimension_numbers = #tpu.dot_dimension_numbers<[1], [0], [0], [1], [0, 0, 1, 1], [], []>} : vector<1x8xbf16>, vector<8x16xbf16>, vector<1x16xf32> -> vector<1x16xf32>
    %229 = arith.addf %228, %217 : vector<1x16xf32>
    %cst_133 = arith.constant 3.000000e+00 : f32
    %230 = vector.broadcast %cst_133 : f32 to vector<1x16xf32>
    %231 = arith.addf %229, %230 : vector<1x16xf32>
    %cst_134 = arith.constant 0.000000e+00 : f32
    %cst_135 = arith.constant 6.000000e+00 : f32
    %232 = vector.broadcast %cst_134 : f32 to vector<1x16xf32>
    %233 = arith.maximumf %232, %231 : vector<1x16xf32>
    %234 = vector.broadcast %cst_135 : f32 to vector<1x16xf32>
    %235 = arith.minimumf %234, %233 : vector<1x16xf32>
    %cst_136 = arith.constant 0.166666672 : f32
    %236 = vector.broadcast %cst_136 : f32 to vector<1x16xf32>
    %237 = arith.mulf %235, %236 : vector<1x16xf32>
    %238 = vector.broadcast %237 : vector<1x16xf32> to vector<36x16xf32>
    %239 = arith.mulf %213, %238 : vector<36x16xf32>
    %c0_137 = arith.constant 0 : index
    %c0_138 = arith.constant 0 : index
    %240 = vector.load %arg22[%c0_137, %c0_138] : memref<16x16xbf16, #tpu.memory_space<vmem>>, vector<16x16xbf16>
    %c0_139 = arith.constant 0 : index
    %c0_140 = arith.constant 0 : index
    %241 = vector.load %arg23[%c0_139, %c0_140] : memref<1x16xf32, #tpu.memory_space<vmem>>, vector<1x16xf32>
    %242 = arith.truncf %239 : vector<36x16xf32> to vector<36x16xbf16>
    %cst_141 = arith.constant dense<0.000000e+00> : vector<36x16xf32>
    %243 = tpu.matmul %242, %240, %cst_141 {dimension_numbers = #tpu.dot_dimension_numbers<[1], [0], [0], [1], [0, 0, 1, 1], [], []>} : vector<36x16xbf16>, vector<16x16xbf16>, vector<36x16xf32> -> vector<36x16xf32>
    %244 = vector.broadcast %241 : vector<1x16xf32> to vector<36x16xf32>
    %245 = arith.addf %243, %244 : vector<36x16xf32>
    %c0_142 = arith.constant 0 : index
    %c0_143 = arith.constant 0 : index
    %246 = vector.load %arg24[%c0_142, %c0_143] : memref<16x32xbf16, #tpu.memory_space<vmem>>, vector<16x32xbf16>
    %c0_144 = arith.constant 0 : index
    %c0_145 = arith.constant 0 : index
    %247 = vector.load %arg25[%c0_144, %c0_145] : memref<1x32xf32, #tpu.memory_space<vmem>>, vector<1x32xf32>
    %248 = arith.truncf %245 : vector<36x16xf32> to vector<36x16xbf16>
    %cst_146 = arith.constant dense<0.000000e+00> : vector<36x32xf32>
    %249 = tpu.matmul %248, %246, %cst_146 {dimension_numbers = #tpu.dot_dimension_numbers<[1], [0], [0], [1], [0, 0, 1, 1], [], []>} : vector<36x16xbf16>, vector<16x32xbf16>, vector<36x32xf32> -> vector<36x32xf32>
    %250 = vector.broadcast %247 : vector<1x32xf32> to vector<36x32xf32>
    %251 = arith.addf %249, %250 : vector<36x32xf32>
    %cst_147 = arith.constant 3.000000e+00 : f32
    %252 = vector.broadcast %cst_147 : f32 to vector<36x32xf32>
    %253 = arith.addf %251, %252 : vector<36x32xf32>
    %cst_148 = arith.constant 0.000000e+00 : f32
    %cst_149 = arith.constant 6.000000e+00 : f32
    %254 = vector.broadcast %cst_148 : f32 to vector<36x32xf32>
    %255 = arith.maximumf %254, %253 : vector<36x32xf32>
    %256 = vector.broadcast %cst_149 : f32 to vector<36x32xf32>
    %257 = arith.minimumf %256, %255 : vector<36x32xf32>
    %258 = arith.mulf %251, %257 : vector<36x32xf32>
    %cst_150 = arith.constant 0.166666672 : f32
    %259 = vector.broadcast %cst_150 : f32 to vector<36x32xf32>
    %260 = arith.mulf %258, %259 : vector<36x32xf32>
    %c0_151 = arith.constant 0 : index
    %c0_152 = arith.constant 0 : index
    %261 = vector.load %arg26[%c0_151, %c0_152] : memref<16x36xf32, #tpu.memory_space<vmem>>, vector<16x36xf32>
    %cst_153 = arith.constant dense<0.000000e+00> : vector<16x32xf32>
    %262 = tpu.matmul %261, %260, %cst_153 {dimension_numbers = #tpu.dot_dimension_numbers<[1], [0], [0], [1], [0, 0, 1, 1], [], []>} : vector<16x36xf32>, vector<36x32xf32>, vector<16x32xf32> -> vector<16x32xf32>
    %c0_154 = arith.constant 0 : index
    %c0_155 = arith.constant 0 : index
    %c0_156 = arith.constant 0 : index
    %263 = vector.load %arg27[%c0_154, %c0_155, %c0_156] : memref<1x16x32xf32, #tpu.memory_space<vmem>>, vector<1x16x32xf32>
    %264 = vector.shape_cast %263 : vector<1x16x32xf32> to vector<16x32xf32>
    %265 = vector.shape_cast %262 : vector<16x32xf32> to vector<1x16x32xf32>
    tpu.vector_store %arg27[%c0_154, %c0_155, %c0_156], %265 {strides = array<i32>} : memref<1x16x32xf32, #tpu.memory_space<vmem>>, vector<1x16x32xf32>,
    return
  }
  func.func @transform_0(%arg0: i32) -> (i32, i32, i32) {
    %c0_i32 = arith.constant 0 : i32
    %c0_i32_0 = arith.constant 0 : i32
    %c0_i32_1 = arith.constant 0 : i32
    return %arg0, %c0_i32, %c0_i32_0 : i32, i32, i32
  }
  func.func @transform_1(%arg0: i32) -> (i32, i32) {
    %c0_i32 = arith.constant 0 : i32
    %c0_i32_0 = arith.constant 0 : i32
    %c0_i32_1 = arith.constant 0 : i32
    return %c0_i32, %c0_i32_0 : i32, i32
  }
  func.func @transform_2(%arg0: i32) -> (i32, i32) {
    %c0_i32 = arith.constant 0 : i32
    %c0_i32_0 = arith.constant 0 : i32
    %c0_i32_1 = arith.constant 0 : i32
    return %c0_i32, %c0_i32_0 : i32, i32
  }
  func.func @transform_3(%arg0: i32) -> (i32, i32, i32) {
    %c0_i32 = arith.constant 0 : i32
    %c0_i32_0 = arith.constant 0 : i32
    %c0_i32_1 = arith.constant 0 : i32
    %c0_i32_2 = arith.constant 0 : i32
    return %c0_i32, %c0_i32_0, %c0_i32_1 : i32, i32, i32
  }
  func.func @transform_4(%arg0: i32) -> (i32, i32) {
    %c0_i32 = arith.constant 0 : i32
    %c0_i32_0 = arith.constant 0 : i32
    %c0_i32_1 = arith.constant 0 : i32
    return %c0_i32, %c0_i32_0 : i32, i32
  }
  func.func @transform_5(%arg0: i32) -> (i32, i32) {
    %c0_i32 = arith.constant 0 : i32
    %c0_i32_0 = arith.constant 0 : i32
    %c0_i32_1 = arith.constant 0 : i32
    return %c0_i32, %c0_i32_0 : i32, i32
  }
  func.func @transform_6(%arg0: i32) -> (i32, i32) {
    %c0_i32 = arith.constant 0 : i32
    %c0_i32_0 = arith.constant 0 : i32
    %c0_i32_1 = arith.constant 0 : i32
    return %c0_i32, %c0_i32_0 : i32, i32
  }
  func.func @transform_7(%arg0: i32) -> (i32, i32) {
    %c0_i32 = arith.constant 0 : i32
    %c0_i32_0 = arith.constant 0 : i32
    %c0_i32_1 = arith.constant 0 : i32
    return %c0_i32, %c0_i32_0 : i32, i32
  }
  func.func @transform_8(%arg0: i32) -> (i32, i32) {
    %c0_i32 = arith.constant 0 : i32
    %c0_i32_0 = arith.constant 0 : i32
    %c0_i32_1 = arith.constant 0 : i32
    return %c0_i32, %c0_i32_0 : i32, i32
  }
  func.func @transform_9(%arg0: i32) -> (i32, i32) {
    %c0_i32 = arith.constant 0 : i32
    %c0_i32_0 = arith.constant 0 : i32
    %c0_i32_1 = arith.constant 0 : i32
    return %c0_i32, %c0_i32_0 : i32, i32
  }
  func.func @transform_10(%arg0: i32) -> (i32, i32) {
    %c0_i32 = arith.constant 0 : i32
    %c0_i32_0 = arith.constant 0 : i32
    %c0_i32_1 = arith.constant 0 : i32
    return %c0_i32, %c0_i32_0 : i32, i32
  }
  func.func @transform_11(%arg0: i32) -> (i32, i32) {
    %c0_i32 = arith.constant 0 : i32
    %c0_i32_0 = arith.constant 0 : i32
    %c0_i32_1 = arith.constant 0 : i32
    return %c0_i32, %c0_i32_0 : i32, i32
  }
  func.func @transform_12(%arg0: i32) -> (i32, i32) {
    %c0_i32 = arith.constant 0 : i32
    %c0_i32_0 = arith.constant 0 : i32
    %c0_i32_1 = arith.constant 0 : i32
    return %c0_i32, %c0_i32_0 : i32, i32
  }
  func.func @transform_13(%arg0: i32) -> (i32, i32) {
    %c0_i32 = arith.constant 0 : i32
    %c0_i32_0 = arith.constant 0 : i32
    %c0_i32_1 = arith.constant 0 : i32
    return %c0_i32, %c0_i32_0 : i32, i32
  }
  func.func @transform_14(%arg0: i32) -> (i32, i32, i32) {
    %c0_i32 = arith.constant 0 : i32
    %c0_i32_0 = arith.constant 0 : i32
    %c0_i32_1 = arith.constant 0 : i32
    %c0_i32_2 = arith.constant 0 : i32
    return %c0_i32, %c0_i32_0, %c0_i32_1 : i32, i32, i32
  }
  func.func @transform_15(%arg0: i32) -> (i32, i32) {
    %c0_i32 = arith.constant 0 : i32
    %c0_i32_0 = arith.constant 0 : i32
    %c0_i32_1 = arith.constant 0 : i32
    return %c0_i32, %c0_i32_0 : i32, i32
  }
  func.func @transform_16(%arg0: i32) -> (i32, i32) {
    %c0_i32 = arith.constant 0 : i32
    %c0_i32_0 = arith.constant 0 : i32
    %c0_i32_1 = arith.constant 0 : i32
    return %c0_i32, %c0_i32_0 : i32, i32
  }
  func.func @transform_17(%arg0: i32) -> (i32, i32) {
    %c0_i32 = arith.constant 0 : i32
    %c0_i32_0 = arith.constant 0 : i32
    %c0_i32_1 = arith.constant 0 : i32
    return %c0_i32, %c0_i32_0 : i32, i32
  }
  func.func @transform_18(%arg0: i32) -> (i32, i32) {
    %c0_i32 = arith.constant 0 : i32
    %c0_i32_0 = arith.constant 0 : i32
    %c0_i32_1 = arith.constant 0 : i32
    return %c0_i32, %c0_i32_0 : i32, i32
  }
  func.func @transform_19(%arg0: i32) -> (i32, i32) {
    %c0_i32 = arith.constant 0 : i32
    %c0_i32_0 = arith.constant 0 : i32
    %c0_i32_1 = arith.constant 0 : i32
    return %c0_i32, %c0_i32_0 : i32, i32
  }
  func.func @transform_20(%arg0: i32) -> (i32, i32) {
    %c0_i32 = arith.constant 0 : i32
    %c0_i32_0 = arith.constant 0 : i32
    %c0_i32_1 = arith.constant 0 : i32
    return %c0_i32, %c0_i32_0 : i32, i32
  }
  func.func @transform_21(%arg0: i32) -> (i32, i32) {
    %c0_i32 = arith.constant 0 : i32
    %c0_i32_0 = arith.constant 0 : i32
    %c0_i32_1 = arith.constant 0 : i32
    return %c0_i32, %c0_i32_0 : i32, i32
  }
  func.func @transform_22(%arg0: i32) -> (i32, i32) {
    %c0_i32 = arith.constant 0 : i32
    %c0_i32_0 = arith.constant 0 : i32
    %c0_i32_1 = arith.constant 0 : i32
    return %c0_i32, %c0_i32_0 : i32, i32
  }
  func.func @transform_23(%arg0: i32) -> (i32, i32) {
    %c0_i32 = arith.constant 0 : i32
    %c0_i32_0 = arith.constant 0 : i32
    %c0_i32_1 = arith.constant 0 : i32
    return %c0_i32, %c0_i32_0 : i32, i32
  }
  func.func @transform_24(%arg0: i32) -> (i32, i32) {
    %c0_i32 = arith.constant 0 : i32
    %c0_i32_0 = arith.constant 0 : i32
    %c0_i32_1 = arith.constant 0 : i32
    return %c0_i32, %c0_i32_0 : i32, i32
  }
  func.func @transform_25(%arg0: i32) -> (i32, i32) {
    %c0_i32 = arith.constant 0 : i32
    %c0_i32_0 = arith.constant 0 : i32
    %c0_i32_1 = arith.constant 0 : i32
    return %c0_i32, %c0_i32_0 : i32, i32
  }
  func.func @transform_26(%arg0: i32) -> (i32, i32, i32) {
    %c0_i32 = arith.constant 0 : i32
    %c0_i32_0 = arith.constant 0 : i32
    %c0_i32_1 = arith.constant 0 : i32
    return %arg0, %c0_i32, %c0_i32_0 : i32, i32, i32
  }
}

</mosaic_0001>

<bundles_post_ra>
// kernel: forward.1
= control target key start
LH: loop header
LB: loop body
LE: loop exit
PB: predicated region body
PF: predicated region fallthrough
CT: control target
= control target key end

     0   :  { %s5500_s0 = inlined_call_operand.vmem [shape: f32[2,36,9], index: 0, kind: input, shape index: {}]   ;;  %s5501_s1 = inlined_call_operand.vmem [shape: bf16[9,8], index: 1, kind: input, shape index: {}]   ;;  %s5502_s2 = inlined_call_operand.vmem [shape: f32[1,8], index: 2, kind: input, shape index: {}]   ;;  %s5503_s3 = inlined_call_operand.vmem [shape: bf16[9,36,36], index: 3, kind: input, shape index: {}, may-alias: {3,14}]   ;;  %s5504_s4 = inlined_call_operand.vmem [shape: f32[9,8], index: 4, kind: input, shape index: {}]   ;;  %s5505_s5 = inlined_call_operand.vmem [shape: f32[1,8], index: 5, kind: input, shape index: {}]   ;;  %s5506_s6 = inlined_call_operand.vmem [shape: bf16[8,8], index: 6, kind: input, shape index: {}]   ;;  %s5507_s7 = inlined_call_operand.vmem [shape: f32[1,8], index: 7, kind: input, shape index: {}]   ;;  %s5508_s8 = inlined_call_operand.vmem [shape: bf16[8,8], index: 8, kind: input, shape index: {}]   ;;  %s5509_s9 = inlined_call_operand.vmem [shape: f32[1,8], index: 9, kind: input, shape index: {}]   ;;  %s5510_s10 = inlined_call_operand.vmem [shape: bf16[8,8], index: 10, kind: input, shape index: {}]   ;;  %s5511_s11 = inlined_call_operand.vmem [shape: f32[1,8], index: 11, kind: input, shape index: {}]   ;;  %s5512_s12 = inlined_call_operand.vmem [shape: bf16[8,16], index: 12, kind: input, shape index: {}]   ;;  %s5513_s13 = inlined_call_operand.vmem [shape: f32[1,16], index: 13, kind: input, shape index: {}]   ;;  %s5514_s14 = inlined_call_operand.vmem [shape: bf16[9,36,36], index: 14, kind: input, shape index: {}, may-alias: {3,14}]   ;;  %s5515_s15 = inlined_call_operand.vmem [shape: f32[9,16], index: 15, kind: input, shape index: {}]   ;;  %s5516_s16 = inlined_call_operand.vmem [shape: f32[1,16], index: 16, kind: input, shape index: {}]   ;;  %s5517_s17 = inlined_call_operand.vmem [shape: bf16[16,8], index: 17, kind: input, shape index: {}]   ;;  %s5518_s18 = inlined_call_operand.vmem [shape: f32[1,8], index: 18, kind: input, shape index: {}]   ;;  %s5519_s19 = inlined_call_operand.vmem [shape: bf16[8,16], index: 19, kind: input, shape index: {}]   ;;  %s5520_s20 = inlined_call_operand.vmem [shape: f32[1,16], index: 20, kind: input, shape index: {}]   ;;  %s5521_s21 = inlined_call_operand.vmem [shape: bf16[16,16], index: 21, kind: input, shape index: {}]   ;;  %s5522_s22 = inlined_call_operand.vmem [shape: f32[1,16], index: 22, kind: input, shape index: {}]   ;;  %s5523_s23 = inlined_call_operand.vmem [shape: bf16[16,32], index: 23, kind: input, shape index: {}]   ;;  %s5524_s24 = inlined_call_operand.vmem [shape: f32[1,32], index: 24, kind: input, shape index: {}]   ;;  %s5525_s25 = inlined_call_operand.vmem [shape: f32[16,36], index: 25, kind: input, shape index: {}]   ;;  %s5526_s26 = inlined_call_operand.hbm [shape: f32[2,16,32], index: 26, kind: output, shape index: {}]  }
   0x1   :  { %5531 = sst [smem:[#allocation6_spill]] %s5500_s0 }
   0x2   :  { %5532 = sst [smem:[#allocation7_spill]] %s5501_s1 }
   0x3   :  { %5533 = sst [smem:[#allocation8_spill]] %s5502_s2 }
   0x4   :  { %5534 = sst [smem:[#allocation9_spill]] %s5503_s3 }
   0x5   :  { %5535 = sst [smem:[#allocation10_spill]] %s5504_s4 }
   0x6   :  { %5536 = sst [smem:[#allocation11_spill]] %s5505_s5 }
   0x7   :  { %5537 = sst [smem:[#allocation12_spill]] %s5506_s6 }
   0x8   :  { %5538 = sst [smem:[#allocation13_spill]] %s5507_s7 }
   0x9   :  { %5539 = sst [smem:[#allocation14_spill]] %s5508_s8 }
   0xa   :  { %5540 = sst [smem:[#allocation15_spill]] %s5509_s9 }
   0xb   :  { %5541 = sst [smem:[#allocation16_spill]] %s5510_s10 }
   0xc   :  { %5542 = sst [smem:[#allocation17_spill]] %s5511_s11 }
   0xd   :  { %5543 = sst [smem:[#allocation18_spill]] %s5512_s12 }
   0xe   :  { %5544 = sst [smem:[#allocation19_spill]] %s5513_s13 }
   0xf   :  { %31 = vsyncpa [#allocation3], 0 }
  0x10   :  { %33 = vsyncpa [#allocation3 + $0x1], 0  ;;  %s4679_s27 = smov 0   ;;  %s4681_s3 = smov 0  }
  0x11   :  { %s4683_s7 = smov 0   ;;  %s4685_s28 = smov 0  }
  0x12 LB: > { %s4700_s8 = sadd.s32 4294967295, %s4536_s28   ;;  %s3554_s4 = sadd.s32 4294967294, %s4536_s28   ;;  %s4536_s28 = sphi %s4685_s28, %s5566_s28   ;;  %s4532_s7 = sphi %s4683_s7, %s5565_s7   ;;  %s4528_s3 = sphi %s4681_s3, %s5564_s3   ;;  %s4524_s27 = sphi %s4679_s27, %s5563_s27  }
  0x13   : > { %s4704_s29 = sadd.s32 1, %s4536_s28   ;;  %s597_s0 = sadd.s32 1, %s4532_s7 }
  0x14   : > { %s594_s9 = ssub.s32 %s4536_s28, %s4704_s29  ;;  %p607_p0 = scmp.ne.s32.totalorder %s4532_s7, %s4528_s3 }
  0x15   : > { %p595_p1 = scmp.eq.s32.totalorder %s594_s9, 0  ;;  %p608_p2 = scmp.eq.s32.totalorder %s4700_s8, 1 }
  0x16   : > { %p613_p3 = scmp.ne.s32.totalorder %s4528_s3, %s4524_s27  ;;  %p614_p4 = scmp.eq.s32.totalorder %s3554_s4, 1 }
  0x17   : > { %s4715_s30 = scalar_select %p595_p1, %s4532_s7, %s597_s0  }
  0x18   : > { %p4717_p5 = por %p608_p2, %p607_p0  ;;  %p4721_p6 = por %p614_p4, %p613_p3 }
  0x19   : > { %5545 = sst [smem:[#allocation5_spill]] %s4715_s30  ;;  %p3557_p7 = scmp.ge.s32.totalorder %s4536_s28, 1 }
  0x1a   : > { %p715_p8 = scmp.lt.s32.totalorder %s4536_s28, 3 }
  0x1c   : > { %p716_p9 = pnand %p3557_p7, %p715_p8 }
  0x1d   : > { %vm823_vm0 = vcmask (!%p716_p9), 1043456   ;;  %v4538_v0 = vmov (!%p716_p9), 0.0   ;;  %s5548_s1 = sld [smem:[#allocation7_spill]] (!%p716_p9)  ;;  %vm824_vm1 = vcmask (!%p716_p9), 1044480   ;;  %p785_p10 = scmp.lt.s32.totalorder (!%p716_p9), %s4700_s8, 1  ;;  %v4539_v2 = vmov (!%p716_p9), 65535  }
  0x1e   : > { %719 = sbr.rel (%p716_p9) target bundleno = 3047 (0xbe7), region = 124  ;;  %3932 = vmatprep.subr.bf16.mxu0 (!%p716_p9), %v4538_v0  ;;  %3946 = vmatprep.subr.bf16.mxu1 (!%p716_p9), %v4538_v0  ;;  %v825_v3 = vsel (!%p716_p9), %vm823_vm0, 4294967295, %v4539_v2  ;;  %vm4540_vm2 = vmmov (!%p716_p9), 0   ;;  %s5549_s6 = sld [smem:[#allocation6_spill]] (!%p716_p9)  ;;  %vm813_vm3 = vcmask (!%p716_p9), 72704   ;;  %vm945_vm4 = vcmask (!%p716_p9), 1041408  }
  0x1f   : > { %3934 = vmatprep.mubr.msk.bf16.mxu0 (!%p716_p9), %vm4540_vm2, %v4538_v0  ;;  %3952 = vmatprep.mubr.msk.bf16.mxu1 (!%p716_p9), %vm4540_vm2, %v4538_v0  ;;  %v826_v4 = vsel (!%p716_p9), %vm824_vm1, %v825_v3, 0  ;;  %s5550_s9 = sld [smem:[#allocation8_spill]] (!%p716_p9)  ;;  %vm935_vm5 = vcmask (!%p716_p9), 293888   ;;  %s5553_s10 = sld [smem:[#allocation12_spill]] (!%p716_p9)  ;;  %vm1823_vm6 = vcmask (!%p716_p9), 64512   ;;  %vm1831_vm7 = vcmask (!%p716_p9), 60416  }
  0x20   : > { %s5559_s12 = sld [smem:[#allocation18_spill]] (!%p716_p9)  ;;  %s5560_s11 = sld [smem:[#allocation17_spill]] (!%p716_p9)  ;;  %vm3069_vm8 = vcmask (!%p716_p9), 130048   ;;  %vm3077_vm9 = vcmask (!%p716_p9), 125952   ;;  %vm3475_vm10 = vcmask (!%p716_p9), 261120  }
  0x21   : > { %s5561_s13 = sld [smem:[#allocation19_spill]] (!%p716_p9) }
  0x23   : > { %v4416_v1 = vld [vmem:[%s5548_s1] sm:$0x1f] (!%p716_p9)  }
  0x24   : > { %v828_v5 = vand.u32 (!%p716_p9), %v4416_v1, %v826_v4 }
  0x25   : > { %s786_s4 = scalar_select %p785_p10, %s4700_s8, 1  ;;  %v3560_v14 = vld [vmem:[%s5550_s9] ss:$0 sm:$0xff] }
  0x26   : > { %3933 = vmatpush3.bf16.msra.mxu0 %v828_v5  ;;  %s5555_s9 = sld [smem:[#allocation14_spill]] }
  0x27   : > { %s4371_s0 = smul.u32 40, %s786_s4  ;;  %3964 = vmatprep.subr.bf16.mxu0 %v4538_v0 }
  0x29   : > { %s789_s1 = scalar_lea.vmem %s5549_s6, %s4371_s0  ;;  %s5552_s0 = sld [smem:[#allocation10_spill]] }
  0x2a   : > { %v791_v6 = vld [vmem:[%s789_s1] sm:$0xff]  ;;  %v792_v7 = vld [vmem:[%s789_s1 + $0x8] sm:$0xff]  ;;  %v793_v9 = vld [vmem:[%s789_s1 + $0x10] sm:$0xff] }
  0x2b   : > { %v796_v8 = vpack.c.bf16 %v792_v7, %v791_v6  ;;  %v794_v10 = vld [vmem:[%s789_s1 + $0x18] sm:$0xff]  ;;  %v795_v12 = vld [vmem:[%s789_s1 + $0x20] sm:$0xf]  ;;  %s5551_s1 = sld [smem:[#allocation9_spill]] }
  0x2c   : > { %v797_v11 = vpack.c.bf16 %v794_v10, %v793_v9  ;;  %v798_v13 = vpack.c.bf16 %v795_v12, %v795_v12 }
  0x2d   : > { %3935 = vmatmul.mubr.msk.bf16.vlgmr.msra.gmra.mrb[0].mxu0 %vm813_vm3, %v796_v8 }
  0x2e   : > { %3938 = vmatprep.mubr.msk.bf16.mxu0 %vm4540_vm2, %v4538_v0 }
  0x31   : > { %v4417_v61 = vld [vmem:[%s5551_s1] sm:$0xff]   ;;  %v4418_v62 = vld [vmem:[%s5551_s1 + $0x14] sm:$0xff]   ;;  %v4419_v63 = vld [vmem:[%s5551_s1 + $0x8] sm:$0xff]  }
  0x32   : > { %v4420_v1 = vld [vmem:[%s5551_s1 + $0x1c] sm:$0xff]   ;;  %v4421_v2 = vld [vmem:[%s5551_s1 + $0x10] ss:$0 sps:$4 sm:$0x33]   ;;  %v4423_v4 = vld [vmem:[%s5551_s1 + $0x28] sm:$0xff]  }
  0x33   : > { %v4422_v3 = vld [vmem:[%s5551_s1 + $0x24] ss:$0 sps:$4 sm:$0x33]   ;;  %v4424_v5 = vld [vmem:[%s5551_s1 + $0x3c] sm:$0xff]   ;;  %v4425_v6 = vld [vmem:[%s5551_s1 + $0x30] sm:$0xff]  }
  0x34   : > { %v4426_v7 = vld [vmem:[%s5551_s1 + $0x44] sm:$0xff]   ;;  %v4427_v8 = vld [vmem:[%s5551_s1 + $0x38] ss:$0 sps:$4 sm:$0x33]   ;;  %v4429_v10 = vld [vmem:[%s5551_s1 + $0x50] sm:$0xff]  }
  0x35   : > { %3939 = vmatmul.mubr.msk.bf16.gmra.mrb[4].mxu0 %vm813_vm3, %v797_v11  ;;  %v4428_v9 = vld [vmem:[%s5551_s1 + $0x4c] ss:$0 sps:$4 sm:$0x33]   ;;  %v4430_v11 = vld [vmem:[%s5551_s1 + $0x64] sm:$0xff]   ;;  %v4431_v12 = vld [vmem:[%s5551_s1 + $0x58] sm:$0xff]  }
  0x36   : > { %3942 = vmatprep.mubr.msk.bf16.mxu0 %vm4540_vm2, %v4538_v0 }
  0x3d   : > { %3943 = vmatmul.mubr.msk.bf16.gmra.mrb[8].mxu0 %vm813_vm3, %v798_v13  ;;  %v4432_v13 = vld [vmem:[%s5551_s1 + $0x6c] sm:$0xff]  }
  0x3e   : > { %3970 = vmatprep.mubr.msk.bf16.mxu0 %vm4540_vm2, %v4538_v0 }
 0x100   : > { %v864_v15 = vpop.f32.mrb[0].mxu0 }
 0x101   : > { %v865_v16 = vadd.f32 %v3560_v14, %v864_v15  ;;  %v3936_v17 = vpop.f32.mrb[1].mxu0  ;;  %v4434_v15 = vld [vmem:[%s5551_s1 + $0x74] ss:$0 sps:$4 sm:$0x33]  }
 0x102   : > { %v867_v18 = vpop.f32.mrb[2].mxu0  ;;  %v4436_v17 = vld [vmem:[%s5551_s1 + $0x8c] sm:$0xff]  }
 0x103   : > { %v886_v19 = vadd.f32 3.0, %v865_v16  ;;  %v868_v20 = vadd.f32 %v3560_v14, %v867_v18  ;;  %v3937_v21 = vpop.f32.mrb[3].mxu0  ;;  %v4437_v18 = vld [vmem:[%s5551_s1 + $0x80] sm:$0xff]  }
 0x104   : > { %v4440_v21 = vld [vmem:[%s5551_s1 + $0x9c] ss:$0 sps:$4 sm:$0x33]  }
 0x105   : > { %v891_v22 = vmax.f32 %v886_v19, 0.0  ;;  %v887_v23 = vadd.f32 3.0, %v868_v20  ;;  %v4438_v19 = vld [vmem:[%s5551_s1 + $0x94] sm:$0xff]  }
 0x107   : > { %v896_v24 = vmin.f32 %v891_v22, 6.0  ;;  %v892_v25 = vmax.f32 %v887_v23, 0.0  ;;  %v4441_v22 = vld [vmem:[%s5551_s1 + $0xa0] sm:$0xff]   ;;  %v4442_v23 = vld [vmem:[%s5551_s1 + $0xa8] sm:$0xff]  }
 0x108   : > { %v872_v26 = vpop.f32.mrb[4].mxu0 }
 0x109   : > { %v901_v27 = vmul.f32 %v896_v24, %v865_v16  ;;  %v897_v28 = vmin.f32 %v892_v25, 6.0  ;;  %v873_v29 = vadd.f32 %v3560_v14, %v872_v26  ;;  %v3940_v30 = vpop.f32.mrb[5].mxu0  ;;  %v4435_v16 = vld [vmem:[%s5551_s1 + $0x78] sm:$0xff]   ;;  %v4443_v24 = vld [vmem:[%s5551_s1 + $0xb0] ss:$0 sps:$4 sm:$0x33]   ;;  %v1005_v25 = vlaneseq }
 0x10a   : > { %v875_v31 = vpop.f32.mrb[6].mxu0 }
 0x10b   : > { %v902_v32 = vmul.f32 %v897_v28, %v868_v20  ;;  %v888_v33 = vadd.f32 3.0, %v873_v29  ;;  %v876_v34 = vadd.f32 %v3560_v14, %v875_v31  ;;  %v3941_v35 = vpop.f32.mrb[7].mxu0  ;;  %v4752_v36 = vmul.f32 0.16666667, %v901_v27 }
 0x10c   : > { %v4439_v20 = vld [vmem:[%s5551_s1 + $0x88] ss:$0 sps:$4 sm:$0x33]   ;;  %v4991_v26 = vshrl.u32 %v1005_v25, 7 }
 0x10d   : > { %v4754_v37 = vmul.f32 0.16666667, %v902_v32  ;;  %v893_v38 = vmax.f32 %v888_v33, 0.0  ;;  %v889_v39 = vadd.f32 3.0, %v876_v34 }
 0x10e   : > { %v4994_v27 = vsub.s32 0, %v4991_v26  ;;  %v1105_v28 = vsub.s32 1, %v4991_v26 }
 0x10f   : > { %v4758_v40 = vpack.c.bf16 %v4754_v37, %v4752_v36  ;;  %v898_v41 = vmin.f32 %v893_v38, 6.0  ;;  %v894_v42 = vmax.f32 %v889_v39, 0.0 }
 0x110   : > { %v880_v43 = vpop.f32.mrb[8].mxu0 }
 0x111   : > { %v903_v44 = vmul.f32 %v898_v41, %v873_v29  ;;  %v899_v45 = vmin.f32 %v894_v42, 6.0  ;;  %v881_v46 = vadd.f32 %v3560_v14, %v880_v43  ;;  %v3944_v47 = vpop.f32.mrb[9].mxu0  ;;  %3947 = vmatpush3.bf16.msra.mxu1 %v4758_v40  ;;  %3965 = vmatpush3.bf16.msra.mxu0 %v4758_v40  ;;  %v4433_v14 = vld [vmem:[%s5551_s1 + $0x60] ss:$0 sps:$4 sm:$0x33]   ;;  %s3788_s1 = sshll.u32 %s4700_s8, 8 }
 0x112   : > { %v883_v48 = vpop.f32.mrb[10].mxu0  ;;  %3948 = vmatprep.subr.bf16.mxu1 %v4538_v0  ;;  %3966 = vmatprep.subr.bf16.mxu0 %v4538_v0  ;;  %v5000_v29 = vld [vmem:[%s5552_s0] sm:$0xff]  ;;  %s5457_s6 = scalar_lea.hbm %s5526_s26, %s3788_s1  ;;  %s4541_s8 = smov [#allocation2]  }
 0x113   : > { %v904_v49 = vmul.f32 %v899_v45, %v876_v34  ;;  %v890_v50 = vadd.f32 3.0, %v881_v46  ;;  %v3945_v51 = vpop.f32.mrb[11].mxu0  ;;  %v4764_v52 = vmul.f32 0.16666667, %v903_v44  ;;  %v1008_v30 = vrot.slane %v5000_v29, %v4994_v27 }
 0x114   : > { %v1106_v31 = vrot.slane %v5000_v29, %v1105_v28 }
 0x115   : > { %v4766_v53 = vmul.f32 0.16666667, %v904_v49  ;;  %v895_v54 = vmax.f32 %v890_v50, 0.0  ;;  %v1819_v50 = vld [vmem:[%s5553_s10] sm:$0xf]  ;;  %s5554_s10 = sld [smem:[#allocation11_spill]] }
 0x117   : > { %v4770_v55 = vpack.c.bf16 %v4766_v53, %v4764_v52  ;;  %v900_v56 = vmin.f32 %v895_v54, 6.0 }
 0x119   : > { %v905_v57 = vmul.f32 %v900_v56, %v881_v46  ;;  %3949 = vmatpush3.bf16.msra.mxu1 %v4770_v55  ;;  %3967 = vmatpush3.bf16.msra.mxu0 %v4770_v55 }
 0x11a   : > { %3950 = vmatprep.subr.bf16.mxu1 %v4538_v0  ;;  %3968 = vmatprep.subr.bf16.mxu0 %v4538_v0 }
 0x11b   : > { %v4776_v58 = vmul.f32 0.16666667, %v905_v57  ;;  %v1847_v57 = vsel %vm823_vm0, %v1819_v50, 0 }
 0x11d   : > { %v916_v59 = vpack.c.bf16 %v4776_v58, %v4776_v58 }
 0x11f   : > { %v4781_v60 = vsel %vm945_vm4, %v916_v59, 0 }
 0x120   : > { %3951 = vmatpush3.bf16.msra.mxu1 %v4781_v60  ;;  %3969 = vmatpush3.bf16.msra.mxu0 %v4781_v60 }
 0x121   : > { %3982 = vmatprep.subr.bf16.mxu1 %v4538_v0  ;;  %4000 = vmatprep.subr.bf16.mxu0 %v4538_v0 }
 0x123   : > { %3953 = vmatmul.mubr.msk.bf16.vlgmr.msra.gmra.mrb[0].mxu1 %vm935_vm5, %v4417_v61  ;;  %3971 = vmatmul.mubr.msk.bf16.vlgmr.msra.gmra.mrb[12].mxu0 %vm935_vm5, %v4418_v62 }
 0x124   : > { %3983 = vmatpush3.bf16.msra.mxu1 %v4758_v40  ;;  %4001 = vmatpush3.bf16.msra.mxu0 %v4758_v40 }
 0x125   : > { %3984 = vmatprep.subr.bf16.mxu1 %v4538_v0  ;;  %4002 = vmatprep.subr.bf16.mxu0 %v4538_v0 }
 0x126   : > { %3956 = vmatprep.mubr.msk.bf16.mxu1 %vm4540_vm2, %v4538_v0  ;;  %3974 = vmatprep.mubr.msk.bf16.mxu0 %vm4540_vm2, %v4538_v0 }
 0x128   : > { %3985 = vmatpush3.bf16.msra.mxu1 %v4770_v55  ;;  %4003 = vmatpush3.bf16.msra.mxu0 %v4770_v55 }
 0x129   : > { %3986 = vmatprep.subr.bf16.mxu1 %v4538_v0  ;;  %4004 = vmatprep.subr.bf16.mxu0 %v4538_v0 }
 0x12b   : > { %3957 = vmatmul.mubr.msk.bf16.gmra.mrb[4].mxu1 %vm935_vm5, %v4419_v63  ;;  %3975 = vmatmul.mubr.msk.bf16.gmra.mrb[16].mxu0 %vm935_vm5, %v4420_v1 }
 0x12c   : > { %3987 = vmatpush3.bf16.msra.mxu1 %v4781_v60  ;;  %4005 = vmatpush3.bf16.msra.mxu0 %v4781_v60 }
 0x12d   : > { %3960 = vmatprep.mubr.msk.bf16.mxu1 %vm4540_vm2, %v4538_v0  ;;  %3978 = vmatprep.mubr.msk.bf16.mxu0 %vm4540_vm2, %v4538_v0 }
 0x12e   : > { %4018 = vmatprep.subr.bf16.mxu1 %v4538_v0  ;;  %4036 = vmatprep.subr.bf16.mxu0 %v4538_v0 }
 0x133   : > { %3961 = vmatmul.mubr.msk.bf16.gmra.mrb[8].mxu1 %vm935_vm5, %v4421_v2  ;;  %3979 = vmatmul.mubr.msk.bf16.gmra.mrb[20].mxu0 %vm935_vm5, %v4422_v3 }
 0x134   : > { %3988 = vmatprep.mubr.msk.bf16.mxu1 %vm4540_vm2, %v4538_v0  ;;  %4006 = vmatprep.mubr.msk.bf16.mxu0 %vm4540_vm2, %v4538_v0 }
 0x13b   : > { %3989 = vmatmul.mubr.msk.bf16.vlgmr.msra.gmra.mrb[12].mxu1 %vm935_vm5, %v4423_v4  ;;  %4007 = vmatmul.mubr.msk.bf16.vlgmr.msra.gmra.mrb[24].mxu0 %vm935_vm5, %v4424_v5 }
 0x13c   : > { %4019 = vmatpush3.bf16.msra.mxu1 %v4758_v40  ;;  %4037 = vmatpush3.bf16.msra.mxu0 %v4758_v40 }
 0x13d   : > { %4020 = vmatprep.subr.bf16.mxu1 %v4538_v0  ;;  %4038 = vmatprep.subr.bf16.mxu0 %v4538_v0 }
 0x13e   : > { %3992 = vmatprep.mubr.msk.bf16.mxu1 %vm4540_vm2, %v4538_v0  ;;  %4010 = vmatprep.mubr.msk.bf16.mxu0 %vm4540_vm2, %v4538_v0 }
 0x140   : > { %4021 = vmatpush3.bf16.msra.mxu1 %v4770_v55  ;;  %4039 = vmatpush3.bf16.msra.mxu0 %v4770_v55 }
 0x141   : > { %4022 = vmatprep.subr.bf16.mxu1 %v4538_v0  ;;  %4040 = vmatprep.subr.bf16.mxu0 %v4538_v0 }
 0x143   : > { %3993 = vmatmul.mubr.msk.bf16.gmra.mrb[16].mxu1 %vm935_vm5, %v4425_v6  ;;  %4011 = vmatmul.mubr.msk.bf16.gmra.mrb[28].mxu0 %vm935_vm5, %v4426_v7 }
 0x144   : > { %4023 = vmatpush3.bf16.msra.mxu1 %v4781_v60  ;;  %4041 = vmatpush3.bf16.msra.mxu0 %v4781_v60 }
 0x145   : > { %3996 = vmatprep.mubr.msk.bf16.mxu1 %vm4540_vm2, %v4538_v0  ;;  %4014 = vmatprep.mubr.msk.bf16.mxu0 %vm4540_vm2, %v4538_v0 }
 0x146   : > { %4054 = vmatprep.subr.bf16.mxu1 %v4538_v0  ;;  %4072 = vmatprep.subr.bf16.mxu0 %v4538_v0 }
 0x14b   : > { %3997 = vmatmul.mubr.msk.bf16.gmra.mrb[20].mxu1 %vm935_vm5, %v4427_v8  ;;  %4015 = vmatmul.mubr.msk.bf16.gmra.mrb[32].mxu0 %vm935_vm5, %v4428_v9 }
 0x14c   : > { %4024 = vmatprep.mubr.msk.bf16.mxu1 %vm4540_vm2, %v4538_v0  ;;  %4042 = vmatprep.mubr.msk.bf16.mxu0 %vm4540_vm2, %v4538_v0 }
 0x153   : > { %4025 = vmatmul.mubr.msk.bf16.vlgmr.msra.gmra.mrb[24].mxu1 %vm935_vm5, %v4429_v10  ;;  %4043 = vmatmul.mubr.msk.bf16.vlgmr.msra.gmra.mrb[36].mxu0 %vm935_vm5, %v4430_v11  ;;  %v1203_v10 = vsub.s32 2, %v4991_v26  ;;  %v1301_v11 = vsub.s32 3, %v4991_v26 }
 0x154   : > { %4055 = vmatpush3.bf16.msra.mxu1 %v4758_v40  ;;  %4073 = vmatpush3.bf16.msra.mxu0 %v4758_v40 }
 0x155   : > { %4056 = vmatprep.subr.bf16.mxu1 %v4538_v0  ;;  %4074 = vmatprep.subr.bf16.mxu0 %v4538_v0 }
 0x156   : > { %4028 = vmatprep.mubr.msk.bf16.mxu1 %vm4540_vm2, %v4538_v0  ;;  %4046 = vmatprep.mubr.msk.bf16.mxu0 %vm4540_vm2, %v4538_v0 }
 0x158   : > { %4057 = vmatpush3.bf16.msra.mxu1 %v4770_v55  ;;  %4075 = vmatpush3.bf16.msra.mxu0 %v4770_v55 }
 0x159   : > { %4058 = vmatprep.subr.bf16.mxu1 %v4538_v0  ;;  %4076 = vmatprep.subr.bf16.mxu0 %v4538_v0 }
 0x15b   : > { %4029 = vmatmul.mubr.msk.bf16.gmra.mrb[28].mxu1 %vm935_vm5, %v4431_v12  ;;  %4047 = vmatmul.mubr.msk.bf16.gmra.mrb[40].mxu0 %vm935_vm5, %v4432_v13 }
 0x15c   : > { %4059 = vmatpush3.bf16.msra.mxu1 %v4781_v60  ;;  %4077 = vmatpush3.bf16.msra.mxu0 %v4781_v60 }
 0x15d   : > { %4032 = vmatprep.mubr.msk.bf16.mxu1 %vm4540_vm2, %v4538_v0  ;;  %4050 = vmatprep.mubr.msk.bf16.mxu0 %vm4540_vm2, %v4538_v0 }
 0x15e   : > { %4090 = vmatprep.subr.bf16.mxu1 %v4538_v0  ;;  %4108 = vmatprep.subr.bf16.mxu0 %v4538_v0 }
 0x163   : > { %4033 = vmatmul.mubr.msk.bf16.gmra.mrb[32].mxu1 %vm935_vm5, %v4433_v14  ;;  %4051 = vmatmul.mubr.msk.bf16.gmra.mrb[44].mxu0 %vm935_vm5, %v4434_v15 }
 0x164   : > { %4060 = vmatprep.mubr.msk.bf16.mxu1 %vm4540_vm2, %v4538_v0  ;;  %4078 = vmatprep.mubr.msk.bf16.mxu0 %vm4540_vm2, %v4538_v0 }
 0x16b   : > { %4061 = vmatmul.mubr.msk.bf16.vlgmr.msra.gmra.mrb[36].mxu1 %vm935_vm5, %v4435_v16  ;;  %4079 = vmatmul.mubr.msk.bf16.vlgmr.msra.gmra.mrb[48].mxu0 %vm935_vm5, %v4436_v17  ;;  %v1204_v17 = vrot.slane %v5000_v29, %v1203_v10 }
 0x16c   : > { %4091 = vmatpush3.bf16.msra.mxu1 %v4758_v40  ;;  %4064 = vmatprep.mubr.msk.bf16.mxu1 %vm4540_vm2, %v4538_v0 }
 0x16d   : > { %4092 = vmatprep.subr.bf16.mxu1 %v4538_v0  ;;  %4082 = vmatprep.mubr.msk.bf16.mxu0 %vm4540_vm2, %v4538_v0 }
 0x16e   : > { %4109 = vmatpush3.bf16.msra.mxu0 %v1847_v57 }
 0x16f   : > { %4114 = vmatprep.subr.bf16.mxu0 %v4538_v0 }
 0x170   : > { %4093 = vmatpush3.bf16.msra.mxu1 %v4770_v55 }
 0x171   : > { %4094 = vmatprep.subr.bf16.mxu1 %v4538_v0 }
 0x173   : > { %4065 = vmatmul.mubr.msk.bf16.gmra.mrb[40].mxu1 %vm935_vm5, %v4437_v18  ;;  %4083 = vmatmul.mubr.msk.bf16.gmra.mrb[52].mxu0 %vm935_vm5, %v4438_v19  ;;  %v1302_v18 = vrot.slane %v5000_v29, %v1301_v11 }
 0x174   : > { %4095 = vmatpush3.bf16.msra.mxu1 %v4781_v60  ;;  %4068 = vmatprep.mubr.msk.bf16.mxu1 %vm4540_vm2, %v4538_v0 }
 0x175   : > { %4086 = vmatprep.mubr.msk.bf16.mxu0 %vm4540_vm2, %v4538_v0  ;;  %4120 = vmatprep.subr.bf16.mxu1 %v4538_v0 }
 0x17b   : > { %4069 = vmatmul.mubr.msk.bf16.gmra.mrb[44].mxu1 %vm935_vm5, %v4439_v20  ;;  %4087 = vmatmul.mubr.msk.bf16.gmra.mrb[56].mxu0 %vm935_vm5, %v4440_v21 }
 0x17c   : > { %4096 = vmatprep.mubr.msk.bf16.mxu1 %vm4540_vm2, %v4538_v0  ;;  %4110 = vmatprep.mubr.msk.bf16.mxu0 %vm4540_vm2, %v4538_v0 }
 0x183   : > { %4097 = vmatmul.mubr.msk.bf16.vlgmr.msra.gmra.mrb[48].mxu1 %vm935_vm5, %v4441_v22 }
 0x184   : > { %4100 = vmatprep.mubr.msk.bf16.mxu1 %vm4540_vm2, %v4538_v0 }
 0x18b   : > { %4101 = vmatmul.mubr.msk.bf16.gmra.mrb[52].mxu1 %vm935_vm5, %v4442_v23 }
 0x18c   : > { %4104 = vmatprep.mubr.msk.bf16.mxu1 %vm4540_vm2, %v4538_v0 }
 0x193   : > { %4105 = vmatmul.mubr.msk.bf16.gmra.mrb[56].mxu1 %vm935_vm5, %v4443_v24 }
 0x194   : > { %4122 = vmatprep.mubr.msk.bf16.mxu1 %vm4540_vm2, %v4538_v0 }
 0x1f6   : > { %v983_v32 = vpop.f32.mrb[0].mxu1  ;;  %v1081_v33 = vpop.f32.mrb[12].mxu0 }
 0x1f7   : > { %v1009_v34 = vmul.f32 %v1008_v30, %v983_v32  ;;  %v1107_v35 = vmul.f32 %v1106_v31, %v1081_v33  ;;  %v3954_v38 = vpop.f32.mrb[1].mxu1  ;;  %v3972_v39 = vpop.f32.mrb[13].mxu0 }
 0x1f8   : > { %v986_v40 = vpop.f32.mrb[2].mxu1  ;;  %v1084_v41 = vpop.f32.mrb[14].mxu0 }
 0x1f9   : > { %v1112_v42 = vadd.f32 %v1107_v35, %v1009_v34  ;;  %v1010_v43 = vmul.f32 %v1008_v30, %v986_v40  ;;  %v1108_v44 = vmul.f32 %v1106_v31, %v1084_v41  ;;  %v3955_v45 = vpop.f32.mrb[3].mxu1  ;;  %v3973_v46 = vpop.f32.mrb[15].mxu0 }
 0x1fb   : > { %v1113_v47 = vadd.f32 %v1108_v44, %v1010_v43 }
 0x1fe   : > { %v991_v48 = vpop.f32.mrb[4].mxu1  ;;  %v1089_v49 = vpop.f32.mrb[16].mxu0 }
 0x1ff   : > { %v1011_v51 = vmul.f32 %v1008_v30, %v991_v48  ;;  %v1109_v54 = vmul.f32 %v1106_v31, %v1089_v49  ;;  %v3958_v55 = vpop.f32.mrb[5].mxu1  ;;  %v3976_v56 = vpop.f32.mrb[17].mxu0 }
 0x200   : > { %v994_v59 = vpop.f32.mrb[6].mxu1  ;;  %v1092_v60 = vpop.f32.mrb[18].mxu0 }
 0x201   : > { %v1114_v61 = vadd.f32 %v1109_v54, %v1011_v51  ;;  %v1012_v62 = vmul.f32 %v1008_v30, %v994_v59  ;;  %v1110_v63 = vmul.f32 %v1106_v31, %v1092_v60  ;;  %v3959_v1 = vpop.f32.mrb[7].mxu1  ;;  %v3977_v2 = vpop.f32.mrb[19].mxu0 }
 0x203   : > { %v1115_v3 = vadd.f32 %v1110_v63, %v1012_v62 }
 0x206   : > { %v999_v4 = vpop.f32.mrb[8].mxu1  ;;  %v1097_v5 = vpop.f32.mrb[20].mxu0 }
 0x207   : > { %v1013_v6 = vmul.f32 %v1008_v30, %v999_v4  ;;  %v1111_v7 = vmul.f32 %v1106_v31, %v1097_v5  ;;  %v3962_v8 = vpop.f32.mrb[9].mxu1  ;;  %v3980_v9 = vpop.f32.mrb[21].mxu0  ;;  %v1399_v5 = vsub.s32 4, %v4991_v26 }
 0x208   : > { %v1002_v12 = vpop.f32.mrb[10].mxu1  ;;  %v1100_v13 = vpop.f32.mrb[22].mxu0 }
 0x209   : > { %v1116_v14 = vadd.f32 %v1111_v7, %v1013_v6  ;;  %v3963_v15 = vpop.f32.mrb[11].mxu1  ;;  %v3981_v16 = vpop.f32.mrb[23].mxu0  ;;  %v1497_v6 = vsub.s32 5, %v4991_v26 }
 0x20b   : > { %v1498_v15 = vrot.slane %v5000_v29, %v1497_v6 }
 0x20e   : > { %v1179_v19 = vpop.f32.mrb[12].mxu1  ;;  %v1277_v20 = vpop.f32.mrb[24].mxu0 }
 0x20f   : > { %v1205_v21 = vmul.f32 %v1204_v17, %v1179_v19  ;;  %v3990_v22 = vpop.f32.mrb[13].mxu1  ;;  %v1303_v23 = vmul.f32 %v1302_v18, %v1277_v20  ;;  %v4008_v24 = vpop.f32.mrb[25].mxu0 }
 0x210   : > { %v1182_v25 = vpop.f32.mrb[14].mxu1  ;;  %v1280_v30 = vpop.f32.mrb[26].mxu0 }
 0x211   : > { %v1210_v31 = vadd.f32 %v1205_v21, %v1112_v42  ;;  %v1206_v32 = vmul.f32 %v1204_v17, %v1182_v25  ;;  %v3991_v33 = vpop.f32.mrb[15].mxu1  ;;  %v1304_v34 = vmul.f32 %v1302_v18, %v1280_v30  ;;  %v4009_v35 = vpop.f32.mrb[27].mxu0 }
 0x213   : > { %v1211_v38 = vadd.f32 %v1206_v32, %v1113_v47  ;;  %v1308_v39 = vadd.f32 %v1303_v23, %v1210_v31 }
 0x215   : > { %v1309_v40 = vadd.f32 %v1304_v34, %v1211_v38 }
 0x216   : > { %v1187_v41 = vpop.f32.mrb[16].mxu1  ;;  %v1285_v43 = vpop.f32.mrb[28].mxu0 }
 0x217   : > { %v1207_v44 = vmul.f32 %v1204_v17, %v1187_v41  ;;  %v3994_v45 = vpop.f32.mrb[17].mxu1  ;;  %v1305_v46 = vmul.f32 %v1302_v18, %v1285_v43  ;;  %v4012_v48 = vpop.f32.mrb[29].mxu0 }
 0x218   : > { %v1190_v49 = vpop.f32.mrb[18].mxu1  ;;  %v1288_v50 = vpop.f32.mrb[30].mxu0 }
 0x219   : > { %v1212_v51 = vadd.f32 %v1207_v44, %v1114_v61  ;;  %v1208_v54 = vmul.f32 %v1204_v17, %v1190_v49  ;;  %v3995_v55 = vpop.f32.mrb[19].mxu1  ;;  %v1306_v56 = vmul.f32 %v1302_v18, %v1288_v50  ;;  %v4013_v42 = vpop.f32.mrb[31].mxu0 }
 0x21b   : > { %v1213_v57 = vadd.f32 %v1208_v54, %v1115_v3  ;;  %v1310_v59 = vadd.f32 %v1305_v46, %v1212_v51  ;;  %v1400_v3 = vrot.slane %v5000_v29, %v1399_v5 }
 0x21d   : > { %v1311_v60 = vadd.f32 %v1306_v56, %v1213_v57 }
 0x21e   : > { %v1195_v62 = vpop.f32.mrb[20].mxu1  ;;  %v1293_v47 = vpop.f32.mrb[32].mxu0 }
 0x21f   : > { %v1209_v63 = vmul.f32 %v1204_v17, %v1195_v62  ;;  %v3998_v1 = vpop.f32.mrb[21].mxu1  ;;  %v1307_v2 = vmul.f32 %v1302_v18, %v1293_v47  ;;  %v4016_v4 = vpop.f32.mrb[33].mxu0 }
 0x220   : > { %v1198_v7 = vpop.f32.mrb[22].mxu1  ;;  %v1296_v8 = vpop.f32.mrb[34].mxu0  ;;  %v1693_v4 = vsub.s32 7, %v4991_v26 }
 0x221   : > { %v1214_v61 = vadd.f32 %v1209_v63, %v1116_v14  ;;  %v3999_v9 = vpop.f32.mrb[23].mxu1  ;;  %v4017_v12 = vpop.f32.mrb[35].mxu0 }
 0x223   : > { %v1312_v13 = vadd.f32 %v1307_v2, %v1214_v61  ;;  %v1595_v2 = vsub.s32 6, %v4991_v26 }
 0x226   : > { %v1375_v16 = vpop.f32.mrb[24].mxu1  ;;  %v1473_v17 = vpop.f32.mrb[36].mxu0 }
 0x227   : > { %v1401_v18 = vmul.f32 %v1400_v3, %v1375_v16  ;;  %v4026_v19 = vpop.f32.mrb[25].mxu1  ;;  %v1499_v20 = vmul.f32 %v1498_v15, %v1473_v17  ;;  %v4044_v21 = vpop.f32.mrb[37].mxu0 }
 0x228   : > { %v1378_v22 = vpop.f32.mrb[26].mxu1  ;;  %v1476_v23 = vpop.f32.mrb[38].mxu0 }
 0x229   : > { %v1406_v14 = vadd.f32 %v1401_v18, %v1308_v39  ;;  %v1402_v24 = vmul.f32 %v1400_v3, %v1378_v22  ;;  %v4027_v25 = vpop.f32.mrb[27].mxu1  ;;  %v1500_v30 = vmul.f32 %v1498_v15, %v1476_v23  ;;  %v4045_v31 = vpop.f32.mrb[39].mxu0 }
 0x22b   : > { %v1407_v32 = vadd.f32 %v1402_v24, %v1309_v40  ;;  %v1504_v33 = vadd.f32 %v1499_v20, %v1406_v14 }
 0x22d   : > { %v1505_v34 = vadd.f32 %v1500_v30, %v1407_v32 }
 0x22e   : > { %v1383_v35 = vpop.f32.mrb[28].mxu1  ;;  %v1481_v38 = vpop.f32.mrb[40].mxu0 }
 0x22f   : > { %v1403_v41 = vmul.f32 %v1400_v3, %v1383_v35  ;;  %v4030_v43 = vpop.f32.mrb[29].mxu1  ;;  %v1501_v44 = vmul.f32 %v1498_v15, %v1481_v38  ;;  %v4048_v45 = vpop.f32.mrb[41].mxu0 }
 0x230   : > { %v1386_v46 = vpop.f32.mrb[30].mxu1  ;;  %v1484_v48 = vpop.f32.mrb[42].mxu0 }
 0x231   : > { %v1408_v49 = vadd.f32 %v1403_v41, %v1310_v59  ;;  %v1404_v50 = vmul.f32 %v1400_v3, %v1386_v46  ;;  %v4031_v51 = vpop.f32.mrb[31].mxu1  ;;  %v1502_v54 = vmul.f32 %v1498_v15, %v1484_v48  ;;  %v4049_v39 = vpop.f32.mrb[43].mxu0 }
 0x233   : > { %v1409_v55 = vadd.f32 %v1404_v50, %v1311_v60  ;;  %v1506_v56 = vadd.f32 %v1501_v44, %v1408_v49  ;;  %v1596_v60 = vrot.slane %v5000_v29, %v1595_v2 }
 0x235   : > { %v1507_v42 = vadd.f32 %v1502_v54, %v1409_v55 }
 0x236   : > { %v1391_v57 = vpop.f32.mrb[32].mxu1  ;;  %v1489_v40 = vpop.f32.mrb[44].mxu0 }
 0x237   : > { %v1405_v62 = vmul.f32 %v1400_v3, %v1391_v57  ;;  %v4034_v47 = vpop.f32.mrb[33].mxu1  ;;  %v1503_v63 = vmul.f32 %v1498_v15, %v1489_v40  ;;  %v4052_v1 = vpop.f32.mrb[45].mxu0  ;;  %v1694_v3 = vrot.slane %v5000_v29, %v1693_v4 }
 0x238   : > { %v1394_v7 = vpop.f32.mrb[34].mxu1  ;;  %v1492_v8 = vpop.f32.mrb[46].mxu0 }
 0x239   : > { %v1410_v59 = vadd.f32 %v1405_v62, %v1312_v13  ;;  %v4035_v61 = vpop.f32.mrb[35].mxu1  ;;  %v4053_v9 = vpop.f32.mrb[47].mxu0 }
 0x23b   : > { %v1508_v12 = vadd.f32 %v1503_v63, %v1410_v59 }
 0x23e   : > { %v1571_v15 = vpop.f32.mrb[36].mxu1  ;;  %v1669_v16 = vpop.f32.mrb[48].mxu0 }
 0x23f   : > { %v1597_v17 = vmul.f32 %v1596_v60, %v1571_v15  ;;  %v4062_v18 = vpop.f32.mrb[37].mxu1  ;;  %v1695_v19 = vmul.f32 %v1694_v3, %v1669_v16  ;;  %v4080_v20 = vpop.f32.mrb[49].mxu0 }
 0x240   : > { %v1574_v21 = vpop.f32.mrb[38].mxu1  ;;  %v1672_v22 = vpop.f32.mrb[50].mxu0 }
 0x241   : > { %v1602_v13 = vadd.f32 %v1597_v17, %v1504_v33  ;;  %v1598_v23 = vmul.f32 %v1596_v60, %v1574_v21  ;;  %v4063_v14 = vpop.f32.mrb[39].mxu1  ;;  %v1696_v24 = vmul.f32 %v1694_v3, %v1672_v22  ;;  %v4081_v25 = vpop.f32.mrb[51].mxu0 }
 0x243   : > { %v1603_v30 = vadd.f32 %v1598_v23, %v1505_v34  ;;  %v1700_v31 = vadd.f32 %v1695_v19, %v1602_v13 }
 0x245   : > { %v1701_v32 = vadd.f32 %v1696_v24, %v1603_v30 }
 0x246   : > { %v1579_v35 = vpop.f32.mrb[40].mxu1  ;;  %v1677_v38 = vpop.f32.mrb[52].mxu0 }
 0x247   : > { %v1599_v41 = vmul.f32 %v1596_v60, %v1579_v35  ;;  %v4066_v29 = vpop.f32.mrb[41].mxu1  ;;  %v1697_v43 = vmul.f32 %v1694_v3, %v1677_v38  ;;  %v4084_v44 = vpop.f32.mrb[53].mxu0 }
 0x248   : > { %v1582_v45 = vpop.f32.mrb[42].mxu1  ;;  %v1680_v46 = vpop.f32.mrb[54].mxu0 }
 0x249   : > { %v1604_v48 = vadd.f32 %v1599_v41, %v1506_v56  ;;  %v1600_v49 = vmul.f32 %v1596_v60, %v1582_v45  ;;  %v4067_v50 = vpop.f32.mrb[43].mxu1  ;;  %v1698_v51 = vmul.f32 %v1694_v3, %v1680_v46  ;;  %v4085_v33 = vpop.f32.mrb[55].mxu0  ;;  %v3659_v56 = vld [vmem:[%s5552_s0 + $0x8] ss:$0 sm:$0xff]  ;;  %s5556_s0 = sld [smem:[#allocation13_spill]] }
 0x24b   : > { %v1605_v54 = vadd.f32 %v1600_v49, %v1507_v42  ;;  %v1702_v39 = vadd.f32 %v1697_v43, %v1604_v48 }
 0x24d   : > { %v1703_v55 = vadd.f32 %v1698_v51, %v1605_v54 }
 0x24e   : > { %v1587_v57 = vpop.f32.mrb[44].mxu1  ;;  %v1685_v34 = vpop.f32.mrb[56].mxu0 }
 0x24f   : > { %v1601_v40 = vmul.f32 %v1596_v60, %v1587_v57  ;;  %v4070_v62 = vpop.f32.mrb[45].mxu1  ;;  %v1699_v47 = vmul.f32 %v1694_v3, %v1685_v34  ;;  %v4088_v63 = vpop.f32.mrb[57].mxu0  ;;  %v3660_v3 = vld [vmem:[%s5554_s10] ss:$0 sm:$0xff]  ;;  %s5558_s10 = sld [smem:[#allocation15_spill]] }
 0x250   : > { %v1590_v1 = vpop.f32.mrb[46].mxu1  ;;  %v1688_v7 = vpop.f32.mrb[58].mxu0 }
 0x251   : > { %v1606_v8 = vadd.f32 %v1601_v40, %v1508_v12  ;;  %v4071_v59 = vpop.f32.mrb[47].mxu1  ;;  %v4089_v61 = vpop.f32.mrb[59].mxu0 }
 0x253   : > { %v1704_v9 = vadd.f32 %v1699_v47, %v1606_v8 }
 0x256   : > { %v1767_v15 = vpop.f32.mrb[48].mxu1 }
 0x257   : > { %v1793_v42 = vmul.f32 %v3659_v56, %v1767_v15  ;;  %v4098_v16 = vpop.f32.mrb[49].mxu1 }
 0x258   : > { %v1770_v17 = vpop.f32.mrb[50].mxu1 }
 0x259   : > { %v1798_v18 = vadd.f32 %v1793_v42, %v1700_v31  ;;  %v1794_v19 = vmul.f32 %v3659_v56, %v1770_v17  ;;  %v4099_v60 = vpop.f32.mrb[51].mxu1  ;;  %v1820_v17 = vld [vmem:[%s5556_s0] sm:$0x1] }
 0x25b   : > { %v1799_v20 = vadd.f32 %v1794_v19, %v1701_v32  ;;  %v5044_v22 = vadd.f32 %v3660_v3, %v1798_v18 }
 0x25d   : > { %v5042_v12 = vadd.f32 %v3660_v3, %v1799_v20  ;;  %v1814_v35 = vmax.f32 %v5044_v22, 0.0 }
 0x25e   : > { %v1775_v21 = vpop.f32.mrb[52].mxu1 }
 0x25f   : > { %v1795_v13 = vmul.f32 %v3659_v56, %v1775_v21  ;;  %v4102_v23 = vpop.f32.mrb[53].mxu1  ;;  %v1815_v24 = vmax.f32 %v5042_v12, 0.0  ;;  %v1824_v45 = vsel %vm1823_vm6, %v1814_v35, 0.0  ;;  %v2034_v12 = vld [vmem:[%s5559_s12] sm:$0xf] }
 0x260   : > { %v1778_v14 = vpop.f32.mrb[54].mxu1 }
 0x261   : > { %v1800_v25 = vadd.f32 %v1795_v13, %v1702_v39  ;;  %v1796_v30 = vmul.f32 %v3659_v56, %v1778_v14  ;;  %v4103_v31 = vpop.f32.mrb[55].mxu1  ;;  %v1825_v41 = vsel %vm1823_vm6, %v1815_v24, 0.0 }
 0x262   : > { %v1826_v51 = vadd.f32 %v1825_v41, %v1824_v45 }
 0x263   : > { %v5048_v32 = vadd.f32 %v3660_v3, %v1800_v25  ;;  %v1801_v38 = vadd.f32 %v1796_v30, %v1703_v55  ;;  %v1822_v25 = vld [vmem:[%s5558_s10] sm:$0x1] }
 0x265   : > { %v1816_v29 = vmax.f32 %v5048_v32, 0.0  ;;  %v5054_v43 = vadd.f32 %v3660_v3, %v1801_v38  ;;  %v3663_v32 = vld [vmem:[%s5560_s11] ss:$0 sm:$0xff] }
 0x266   : > { %v1783_v44 = vpop.f32.mrb[56].mxu1 }
 0x267   : > { %v1827_v46 = vsel %vm1823_vm6, %v1816_v29, 0.0  ;;  %v1817_v48 = vmax.f32 %v5054_v43, 0.0  ;;  %v1797_v49 = vmul.f32 %v3659_v56, %v1783_v44  ;;  %v4106_v50 = vpop.f32.mrb[57].mxu1 }
 0x268   : > { %v1786_v33 = vpop.f32.mrb[58].mxu1  ;;  %v1828_v55 = vadd.f32 %v1827_v46, %v1826_v51 }
 0x269   : > { %v1802_v54 = vadd.f32 %v1797_v49, %v1704_v9  ;;  %v4107_v39 = vpop.f32.mrb[59].mxu1  ;;  %v1829_v57 = vsel %vm1823_vm6, %v1817_v48, 0.0  ;;  %v1821_v9 = vld [vmem:[%s5555_s9] sm:$0xf]  ;;  %s5557_s9 = sld [smem:[#allocation16_spill]] }
 0x26a   : > { %v1830_v62 = vadd.f32 %v1829_v57, %v1828_v55  ;;  %v1895_v16 = vsel %vm823_vm0, %v1821_v9, 0 }
 0x26b   : > { %v1813_v34 = vadd.f32 %v3660_v3, %v1802_v54 }
 0x26d   : > { %v1818_v40 = vmax.f32 %v1813_v34, 0.0 }
 0x26f   : > { %v1832_v47 = vsel %vm1831_vm7, %v1818_v40, 0.0  ;;  %v1950_v23 = vld [vmem:[%s5557_s9] sm:$0xf]  ;;  %s782_s9 = sand.u32 1, %s4528_s3  }
 0x270   : > { %v1833_v63 = vadd.f32 %v1832_v47, %v1830_v62  ;;  %v1971_v14 = vsel %vm823_vm0, %v1950_v23, 0  ;;  %s3558_s0 = sshll.u32 %s782_s9, 4  ;;  %s5459_s4 = scalar_lea.sflag [#allocation3], %s782_s9 }
 0x271   : > { %4121 = vmatpush3.bf16.msra.mxu1 %v1971_v14  ;;  %s784_s30 = scalar_lea.vmem [#allocation2], %s3558_s0 }
 0x272   : > { %v1834_v1 = vrot.slane %v1833_v63, 4  ;;  %4148 = vmatprep.subr.bf16.mxu1 %v4538_v0  ;;  %s3492_s10 = sshll.u32 %s784_s30, 4  ;;  %s5452_s10 = int_to_ptr.vmem [resolvable:$true] %s3492_s10 }
 0x273   : > { %s4474_s0 = scalar_lea.vmem %s5452_s10, 256 }
 0x274   : > { %v1835_v7 = vadd.f32 %v1834_v1, %v1833_v63  ;;  %p4475_p11 = scmp.ne.s32.totalorder %s5452_s10, %s4474_s0 }
 0x276   : > { %v1836_v8 = vrot.slane %v1835_v7, 2  ;;  %p4476_p12 = pnand %p4475_p11, %p4717_p5 }
 0x278   : > { %v1837_v59 = vadd.f32 %v1836_v8, %v1835_v7  ;;  %p4477_p13 = pneg %p4476_p12 }
 0x27a   : > { %v1838_v61 = vrot.slane %v1837_v59, 1 }
 0x27c   : > { %v1839_v56 = vadd.f32 %v1838_v61, %v1837_v59 }
 0x27e   : > { %v1841_v15 = vmul.f32 0.027777778, %v1839_v56 }
 0x280   : > { %v1842_v42 = vpack.c.bf16 %v1841_v15, %v1841_v15 }
 0x282   : > { %4111 = vmatmul.mubr.msk.bf16.vlgmr.msra.gmra.mrb[60].mxu0 %vm1823_vm6, %v1842_v42 }
 0x283   : > { %4116 = vmatprep.mubr.msk.bf16.mxu0 %vm4540_vm2, %v4538_v0  ;;  %4115 = vmatpush3.bf16.msra.mxu0 %v1895_v16 }
 0x284   : > { %4134 = vmatprep.subr.bf16.mxu0 %v4538_v0 }
 0x355   : > { %v1883_v18 = vpop.f32.mrb[60].mxu0 }
 0x356   : > { %v1884_v19 = vadd.f32 %v1883_v18, %v1820_v17  ;;  %v4112_v60 = vpop.f32.mrb[61].mxu0 }
 0x357   : > { %v1886_v20 = vpop.f32.mrb[62].mxu0 }
 0x358   : > { %v1889_v3 = vmax.f32 %v1884_v19, 0.0  ;;  %v4113_v21 = vpop.f32.mrb[63].mxu0 }
 0x35a   : > { %v1890_v13 = vpack.c.bf16 %v1889_v3, %v1889_v3 }
 0x35c   : > { %4117 = vmatmul.mubr.msk.bf16.vlgmr.msra.gmra.mrb[64].mxu0 %vm1823_vm6, %v1890_v13 }
 0x35d   : > { %4136 = vmatprep.mubr.msk.bf16.mxu0 %vm4540_vm2, %v4538_v0 }
 0x42f   : > { %v1931_v30 = vpop.f32.mrb[64].mxu0 }
 0x430   : > { %v1932_v31 = vadd.f32 %v1931_v30, %v1822_v25  ;;  %v4118_v38 = vpop.f32.mrb[65].mxu0 }
 0x431   : > { %v1934_v41 = vpop.f32.mrb[66].mxu0 }
 0x432   : > { %v1937_v43 = vadd.f32 3.0, %v1932_v31  ;;  %v4119_v44 = vpop.f32.mrb[67].mxu0 }
 0x434   : > { %v1938_v45 = vmax.f32 %v1937_v43, 0.0 }
 0x436   : > { %v1939_v46 = vmin.f32 %v1938_v45, 6.0 }
 0x438   : > { %v1940_v49 = vmul.f32 0.16666667, %v1939_v46 }
 0x43a   : > { %v1944_v50 = vrot.slane %v1940_v49, %v4994_v27 }
 0x43c   : > { %v1945_v51 = vmul.f32 %v1944_v50, %v1814_v35  ;;  %v1946_v33 = vmul.f32 %v1944_v50, %v1815_v24  ;;  %v1947_v39 = vmul.f32 %v1944_v50, %v1816_v29  ;;  %v1948_v55 = vmul.f32 %v1944_v50, %v1817_v48 }
 0x43d   : > { %v1949_v22 = vmul.f32 %v1944_v50, %v1818_v40  ;;  %v2055_v24 = vsel %vm823_vm0, %v2034_v12, 0 }
 0x43e   : > { %v1952_v54 = vpack.c.bf16 %v1946_v33, %v1945_v51  ;;  %v1953_v57 = vpack.c.bf16 %v1948_v55, %v1947_v39  ;;  %4135 = vmatpush3.bf16.msra.mxu0 %v2055_v24 }
 0x43f   : > { %v1954_v35 = vpack.c.bf16 %v1949_v22, %v1949_v22  ;;  %4166 = vmatprep.subr.bf16.mxu0 %v4538_v0 }
 0x440   : > { %4123 = vmatmul.mubr.msk.bf16.vlgmr.msra.gmra.mrb[60].mxu1 %vm1823_vm6, %v1952_v54 }
 0x441   : > { %4126 = vmatprep.mubr.msk.bf16.mxu1 %vm4540_vm2, %v4538_v0 }
 0x448   : > { %4127 = vmatmul.mubr.msk.bf16.gmra.mrb[64].mxu1 %vm1823_vm6, %v1953_v57 }
 0x449   : > { %4130 = vmatprep.mubr.msk.bf16.mxu1 %vm4540_vm2, %v4538_v0 }
 0x450   : > { %4131 = vmatmul.mubr.msk.bf16.gmra.mrb[68].mxu1 %vm1823_vm6, %v1954_v35 }
 0x451   : > { %4154 = vmatprep.mubr.msk.bf16.mxu1 %vm4540_vm2, %v4538_v0 }
 0x513   : > { %v2007_v29 = vpop.f32.mrb[60].mxu1 }
 0x514   : > { %v2008_v48 = vadd.f32 %v3663_v32, %v2007_v29  ;;  %v4124_v34 = vpop.f32.mrb[61].mxu1 }
 0x515   : > { %v2010_v40 = vpop.f32.mrb[62].mxu1 }
 0x516   : > { %v2011_v62 = vadd.f32 %v3663_v32, %v2010_v40  ;;  %v4125_v47 = vpop.f32.mrb[63].mxu1  ;;  %v2029_v63 = vadd.f32 %v2008_v48, %v4752_v36 }
 0x518   : > { %v2030_v1 = vadd.f32 %v2011_v62, %v4754_v37 }
 0x51a   : > { %v2036_v7 = vpack.c.bf16 %v2030_v1, %v2029_v63 }
 0x51b   : > { %v2015_v8 = vpop.f32.mrb[64].mxu1 }
 0x51c   : > { %v2016_v59 = vadd.f32 %v3663_v32, %v2015_v8  ;;  %v4128_v61 = vpop.f32.mrb[65].mxu1  ;;  %4137 = vmatmul.mubr.msk.bf16.vlgmr.msra.gmra.mrb[68].mxu0 %vm1823_vm6, %v2036_v7 }
 0x51d   : > { %v2018_v56 = vpop.f32.mrb[66].mxu1  ;;  %4140 = vmatprep.mubr.msk.bf16.mxu0 %vm4540_vm2, %v4538_v0 }
 0x51e   : > { %v2019_v15 = vadd.f32 %v3663_v32, %v2018_v56  ;;  %v4129_v42 = vpop.f32.mrb[67].mxu1  ;;  %v2031_v9 = vadd.f32 %v2016_v59, %v4764_v52  ;;  %v3667_v52 = vld [vmem:[%s5561_s13] ss:$0 sm:$0xff]  ;;  %s4478_s13 = sshll.u32 %s4541_s8, 4  ;;  %s4479_s13 = int_to_ptr.vmem [resolvable:$false] %s4478_s13 }
 0x51f   : > { %s4480_s11 = scalar_lea.vmem %s4479_s13, 512  ;;  %p4481_p0 = scmp.lt.s32.totalorder %s5452_s10, %s4479_s13 }
 0x520   : > { %v2032_v16 = vadd.f32 %v2019_v15, %v4766_v53  ;;  %p4482_p1 = scmp.lt.s32.totalorder %s4480_s11, %s4474_s0 }
 0x522   : > { %v2037_v17 = vpack.c.bf16 %v2032_v16, %v2031_v9  ;;  %p4483_p2 = por %p4482_p1, %p4481_p0 }
 0x523   : > { %v2023_v36 = vpop.f32.mrb[68].mxu1 }
 0x524   : > { %v2024_v18 = vadd.f32 %v3663_v32, %v2023_v36  ;;  %v4132_v37 = vpop.f32.mrb[69].mxu1  ;;  %4141 = vmatmul.mubr.msk.bf16.gmra.mrb[72].mxu0 %vm1823_vm6, %v2037_v17  ;;  %v4444_v36 = vld [vmem:[%s5514_s14] sm:$0xff]   ;;  %p4484_p3 = pnand %p4483_p2, %p4477_p13 }
 0x525   : > { %v2026_v19 = vpop.f32.mrb[70].mxu1  ;;  %4144 = vmatprep.mubr.msk.bf16.mxu0 %vm4540_vm2, %v4538_v0  ;;  %v4446_v37 = vld [vmem:[%s5514_s14 + $0x8] sm:$0xff]  }
 0x526   : > { %v2033_v60 = vadd.f32 %v2024_v18, %v4776_v58  ;;  %v4133_v20 = vpop.f32.mrb[71].mxu1  ;;  %v4445_v18 = vld [vmem:[%s5514_s14 + $0x14] sm:$0xff]   ;;  %v4447_v19 = vld [vmem:[%s5514_s14 + $0x1c] sm:$0xff]  }
 0x527   : > { %v4449_v20 = vld [vmem:[%s5514_s14 + $0x24] ss:$0 sps:$4 sm:$0x33]  }
 0x528   : > { %v2038_v3 = vpack.c.bf16 %v2033_v60, %v2033_v60  ;;  %v4448_v60 = vld [vmem:[%s5514_s14 + $0x10] ss:$0 sps:$4 sm:$0x33]  }
 0x52c   : > { %4145 = vmatmul.mubr.msk.bf16.gmra.mrb[76].mxu0 %vm1823_vm6, %v2038_v3  ;;  %v4450_v3 = vld [vmem:[%s5514_s14 + $0x28] sm:$0xff]  }
 0x52d   : > { %4172 = vmatprep.mubr.msk.bf16.mxu0 %vm4540_vm2, %v4538_v0 }
 0x5ef   : > { %v2091_v53 = vpop.f32.mrb[68].mxu0 }
 0x5f0   : > { %v2092_v21 = vadd.f32 %v3667_v52, %v2091_v53  ;;  %v4138_v13 = vpop.f32.mrb[69].mxu0  ;;  %v4452_v53 = vld [vmem:[%s5514_s14 + $0x30] sm:$0xff]  }
 0x5f1   : > { %v2094_v23 = vpop.f32.mrb[70].mxu0  ;;  %v4454_v13 = vld [vmem:[%s5514_s14 + $0x38] ss:$0 sps:$4 sm:$0x33]  }
 0x5f2   : > { %v2113_v14 = vadd.f32 3.0, %v2092_v21  ;;  %v2095_v25 = vadd.f32 %v3667_v52, %v2094_v23  ;;  %v4139_v30 = vpop.f32.mrb[71].mxu0  ;;  %v4455_v23 = vld [vmem:[%s5514_s14 + $0x4c] ss:$0 sps:$4 sm:$0x33]  }
 0x5f3   : > { %v4458_v30 = vld [vmem:[%s5514_s14 + $0x58] sm:$0xff]  }
 0x5f4   : > { %v2118_v31 = vmax.f32 %v2113_v14, 0.0  ;;  %v2114_v58 = vadd.f32 3.0, %v2095_v25  ;;  %v4456_v14 = vld [vmem:[%s5514_s14 + $0x50] sm:$0xff]  }
 0x5f6   : > { %v2123_v38 = vmin.f32 %v2118_v31, 6.0  ;;  %v2119_v41 = vmax.f32 %v2114_v58, 0.0  ;;  %v4459_v31 = vld [vmem:[%s5514_s14 + $0x6c] sm:$0xff]   ;;  %v4460_v58 = vld [vmem:[%s5514_s14 + $0x60] ss:$0 sps:$4 sm:$0x33]  }
 0x5f7   : > { %v2099_v43 = vpop.f32.mrb[72].mxu0 }
 0x5f8   : > { %v2128_v44 = vmul.f32 %v2123_v38, %v2092_v21  ;;  %v2124_v45 = vmin.f32 %v2119_v41, 6.0  ;;  %v2100_v46 = vadd.f32 %v3667_v52, %v2099_v43  ;;  %v4142_v49 = vpop.f32.mrb[73].mxu0  ;;  %v4453_v21 = vld [vmem:[%s5514_s14 + $0x44] sm:$0xff]   ;;  %v4461_v38 = vld [vmem:[%s5514_s14 + $0x74] ss:$0 sps:$4 sm:$0x33]  }
 0x5f9   : > { %v2102_v50 = vpop.f32.mrb[74].mxu0  ;;  %v4462_v41 = vld [vmem:[%s5514_s14 + $0x78] sm:$0xff]   ;;  %v4463_v43 = vld [vmem:[%s5514_s14 + $0x8c] sm:$0xff]  }
 0x5fa   : > { %v2129_v51 = vmul.f32 %v2124_v45, %v2095_v25  ;;  %v2115_v33 = vadd.f32 3.0, %v2100_v46  ;;  %v2103_v54 = vadd.f32 %v3667_v52, %v2102_v50  ;;  %v4143_v39 = vpop.f32.mrb[75].mxu0  ;;  %v2133_v55 = vmul.f32 0.16666667, %v2128_v44  ;;  %v4457_v25 = vld [vmem:[%s5514_s14 + $0x64] sm:$0xff]   ;;  %v4465_v45 = vld [vmem:[%s5514_s14 + $0x94] sm:$0xff]  }
 0x5fb   : > { %v4464_v44 = vld [vmem:[%s5514_s14 + $0x80] sm:$0xff]   ;;  %v4467_v49 = vld [vmem:[%s5514_s14 + $0x9c] ss:$0 sps:$4 sm:$0x33]  }
 0x5fc   : > { %v2134_v57 = vmul.f32 0.16666667, %v2129_v51  ;;  %v2120_v22 = vmax.f32 %v2115_v33, 0.0  ;;  %v2116_v35 = vadd.f32 3.0, %v2103_v54  ;;  %v4468_v50 = vld [vmem:[%s5514_s14 + $0xa0] sm:$0xff]   ;;  %v4469_v51 = vld [vmem:[%s5514_s14 + $0xa8] sm:$0xff]  }
 0x5fd   : > { %v4470_v33 = vld [vmem:[%s5514_s14 + $0xb0] ss:$0 sps:$4 sm:$0x33]  }
 0x5fe   : > { %v5127_v12 = vpack.c.bf16 %v2134_v57, %v2133_v55  ;;  %v2125_v24 = vmin.f32 %v2120_v22, 6.0  ;;  %v2121_v32 = vmax.f32 %v2116_v35, 0.0 }
 0x5ff   : > { %v2107_v29 = vpop.f32.mrb[76].mxu0 }
 0x600   : > { %v2130_v48 = vmul.f32 %v2125_v24, %v2100_v46  ;;  %v2126_v34 = vmin.f32 %v2121_v32, 6.0  ;;  %v2108_v40 = vadd.f32 %v3667_v52, %v2107_v29  ;;  %v4146_v62 = vpop.f32.mrb[77].mxu0  ;;  %4149 = vmatpush3.bf16.msra.mxu1 %v5127_v12  ;;  %4167 = vmatpush3.bf16.msra.mxu0 %v5127_v12  ;;  %v4451_v52 = vld [vmem:[%s5514_s14 + $0x3c] sm:$0xff]   ;;  %v4466_v46 = vld [vmem:[%s5514_s14 + $0x88] ss:$0 sps:$4 sm:$0x33]  }
 0x601   : > { %v2110_v47 = vpop.f32.mrb[78].mxu0  ;;  %4150 = vmatprep.subr.bf16.mxu1 %v4538_v0  ;;  %4168 = vmatprep.subr.bf16.mxu0 %v4538_v0 }
 0x602   : > { %v2131_v63 = vmul.f32 %v2126_v34, %v2103_v54  ;;  %v2117_v1 = vadd.f32 3.0, %v2108_v40  ;;  %v4147_v7 = vpop.f32.mrb[79].mxu0  ;;  %v2135_v8 = vmul.f32 0.16666667, %v2130_v48  ;;  %v5353_v54 = vld [vmem:[%s5515_s15] sm:$0xff] }
 0x603   : > { %v2233_v39 = vrot.slane %v5353_v54, %v4994_v27  ;;  %v2331_v55 = vrot.slane %v5353_v54, %v1105_v28 }
 0x604   : > { %v2136_v59 = vmul.f32 0.16666667, %v2131_v63  ;;  %v2122_v61 = vmax.f32 %v2117_v1, 0.0 }
 0x606   : > { %v5133_v56 = vpack.c.bf16 %v2136_v59, %v2135_v8  ;;  %v2127_v15 = vmin.f32 %v2122_v61, 6.0 }
 0x608   : > { %v2132_v42 = vmul.f32 %v2127_v15, %v2108_v40  ;;  %4151 = vmatpush3.bf16.msra.mxu1 %v5133_v56  ;;  %4169 = vmatpush3.bf16.msra.mxu0 %v5133_v56 }
 0x609   : > { %4152 = vmatprep.subr.bf16.mxu1 %v4538_v0  ;;  %4170 = vmatprep.subr.bf16.mxu0 %v4538_v0 }
 0x60a   : > { %v2137_v9 = vmul.f32 0.16666667, %v2132_v42 }
 0x60c   : > { %v2143_v16 = vpack.c.bf16 %v2137_v9, %v2137_v9 }
 0x60e   : > { %v5140_v17 = vsel %vm945_vm4, %v2143_v16, 0 }
 0x60f   : > { %4153 = vmatpush3.bf16.msra.mxu1 %v5140_v17  ;;  %4171 = vmatpush3.bf16.msra.mxu0 %v5140_v17 }
 0x610   : > { %4184 = vmatprep.subr.bf16.mxu1 %v4538_v0  ;;  %4202 = vmatprep.subr.bf16.mxu0 %v4538_v0 }
 0x612   : > { %4155 = vmatmul.mubr.msk.bf16.vlgmr.msra.gmra.mrb[72].mxu1 %vm935_vm5, %v4444_v36  ;;  %4173 = vmatmul.mubr.msk.bf16.vlgmr.msra.gmra.mrb[80].mxu0 %vm935_vm5, %v4445_v18 }
 0x613   : > { %4185 = vmatpush3.bf16.msra.mxu1 %v5127_v12  ;;  %4203 = vmatpush3.bf16.msra.mxu0 %v5127_v12 }
 0x614   : > { %4186 = vmatprep.subr.bf16.mxu1 %v4538_v0  ;;  %4204 = vmatprep.subr.bf16.mxu0 %v4538_v0 }
 0x615   : > { %4158 = vmatprep.mubr.msk.bf16.mxu1 %vm4540_vm2, %v4538_v0  ;;  %4176 = vmatprep.mubr.msk.bf16.mxu0 %vm4540_vm2, %v4538_v0 }
 0x617   : > { %4187 = vmatpush3.bf16.msra.mxu1 %v5133_v56  ;;  %4205 = vmatpush3.bf16.msra.mxu0 %v5133_v56 }
 0x618   : > { %4188 = vmatprep.subr.bf16.mxu1 %v4538_v0  ;;  %4206 = vmatprep.subr.bf16.mxu0 %v4538_v0 }
 0x61a   : > { %4159 = vmatmul.mubr.msk.bf16.gmra.mrb[76].mxu1 %vm935_vm5, %v4446_v37  ;;  %4177 = vmatmul.mubr.msk.bf16.gmra.mrb[84].mxu0 %vm935_vm5, %v4447_v19 }
 0x61b   : > { %4189 = vmatpush3.bf16.msra.mxu1 %v5140_v17  ;;  %4207 = vmatpush3.bf16.msra.mxu0 %v5140_v17 }
 0x61c   : > { %4162 = vmatprep.mubr.msk.bf16.mxu1 %vm4540_vm2, %v4538_v0  ;;  %4180 = vmatprep.mubr.msk.bf16.mxu0 %vm4540_vm2, %v4538_v0 }
 0x61d   : > { %4220 = vmatprep.subr.bf16.mxu1 %v4538_v0  ;;  %4238 = vmatprep.subr.bf16.mxu0 %v4538_v0 }
 0x622   : > { %4163 = vmatmul.mubr.msk.bf16.gmra.mrb[80].mxu1 %vm935_vm5, %v4448_v60  ;;  %4181 = vmatmul.mubr.msk.bf16.gmra.mrb[88].mxu0 %vm935_vm5, %v4449_v20  ;;  %v4471_v20 = vld [vmem:[%s5517_s17] sm:$0xff]  }
 0x623   : > { %4190 = vmatprep.mubr.msk.bf16.mxu1 %vm4540_vm2, %v4538_v0  ;;  %4208 = vmatprep.mubr.msk.bf16.mxu0 %vm4540_vm2, %v4538_v0 }
 0x62a   : > { %4191 = vmatmul.mubr.msk.bf16.vlgmr.msra.gmra.mrb[84].mxu1 %vm935_vm5, %v4450_v3  ;;  %4209 = vmatmul.mubr.msk.bf16.vlgmr.msra.gmra.mrb[92].mxu0 %vm935_vm5, %v4451_v52 }
 0x62b   : > { %4221 = vmatpush3.bf16.msra.mxu1 %v5127_v12  ;;  %4239 = vmatpush3.bf16.msra.mxu0 %v5127_v12 }
 0x62c   : > { %4222 = vmatprep.subr.bf16.mxu1 %v4538_v0  ;;  %4240 = vmatprep.subr.bf16.mxu0 %v4538_v0 }
 0x62d   : > { %4194 = vmatprep.mubr.msk.bf16.mxu1 %vm4540_vm2, %v4538_v0  ;;  %4212 = vmatprep.mubr.msk.bf16.mxu0 %vm4540_vm2, %v4538_v0 }
 0x62f   : > { %4223 = vmatpush3.bf16.msra.mxu1 %v5133_v56  ;;  %4241 = vmatpush3.bf16.msra.mxu0 %v5133_v56 }
 0x630   : > { %4224 = vmatprep.subr.bf16.mxu1 %v4538_v0  ;;  %4242 = vmatprep.subr.bf16.mxu0 %v4538_v0 }
 0x632   : > { %4195 = vmatmul.mubr.msk.bf16.gmra.mrb[88].mxu1 %vm935_vm5, %v4452_v53  ;;  %4213 = vmatmul.mubr.msk.bf16.gmra.mrb[96].mxu0 %vm935_vm5, %v4453_v21 }
 0x633   : > { %4225 = vmatpush3.bf16.msra.mxu1 %v5140_v17  ;;  %4243 = vmatpush3.bf16.msra.mxu0 %v5140_v17 }
 0x634   : > { %4198 = vmatprep.mubr.msk.bf16.mxu1 %vm4540_vm2, %v4538_v0  ;;  %4216 = vmatprep.mubr.msk.bf16.mxu0 %vm4540_vm2, %v4538_v0 }
 0x635   : > { %4256 = vmatprep.subr.bf16.mxu1 %v4538_v0  ;;  %4274 = vmatprep.subr.bf16.mxu0 %v4538_v0 }
 0x63a   : > { %4199 = vmatmul.mubr.msk.bf16.gmra.mrb[92].mxu1 %vm935_vm5, %v4454_v13  ;;  %4217 = vmatmul.mubr.msk.bf16.gmra.mrb[100].mxu0 %vm935_vm5, %v4455_v23 }
 0x63b   : > { %4226 = vmatprep.mubr.msk.bf16.mxu1 %vm4540_vm2, %v4538_v0  ;;  %4244 = vmatprep.mubr.msk.bf16.mxu0 %vm4540_vm2, %v4538_v0 }
 0x642   : > { %4227 = vmatmul.mubr.msk.bf16.vlgmr.msra.gmra.mrb[96].mxu1 %vm935_vm5, %v4456_v14  ;;  %4245 = vmatmul.mubr.msk.bf16.vlgmr.msra.gmra.mrb[104].mxu0 %vm935_vm5, %v4457_v25 }
 0x643   : > { %4257 = vmatpush3.bf16.msra.mxu1 %v5127_v12  ;;  %4275 = vmatpush3.bf16.msra.mxu0 %v5127_v12 }
 0x644   : > { %4258 = vmatprep.subr.bf16.mxu1 %v4538_v0  ;;  %4276 = vmatprep.subr.bf16.mxu0 %v4538_v0 }
 0x645   : > { %4230 = vmatprep.mubr.msk.bf16.mxu1 %vm4540_vm2, %v4538_v0  ;;  %4248 = vmatprep.mubr.msk.bf16.mxu0 %vm4540_vm2, %v4538_v0 }
 0x647   : > { %4259 = vmatpush3.bf16.msra.mxu1 %v5133_v56  ;;  %4277 = vmatpush3.bf16.msra.mxu0 %v5133_v56 }
 0x648   : > { %4260 = vmatprep.subr.bf16.mxu1 %v4538_v0  ;;  %4278 = vmatprep.subr.bf16.mxu0 %v4538_v0 }
 0x64a   : > { %4231 = vmatmul.mubr.msk.bf16.gmra.mrb[100].mxu1 %vm935_vm5, %v4458_v30  ;;  %4249 = vmatmul.mubr.msk.bf16.gmra.mrb[108].mxu0 %vm935_vm5, %v4459_v31  ;;  %v2429_v31 = vrot.slane %v5353_v54, %v1203_v10 }
 0x64b   : > { %4261 = vmatpush3.bf16.msra.mxu1 %v5140_v17  ;;  %4279 = vmatpush3.bf16.msra.mxu0 %v5140_v17 }
 0x64c   : > { %4234 = vmatprep.mubr.msk.bf16.mxu1 %vm4540_vm2, %v4538_v0  ;;  %4252 = vmatprep.mubr.msk.bf16.mxu0 %vm4540_vm2, %v4538_v0 }
 0x64d   : > { %4292 = vmatprep.subr.bf16.mxu1 %v4538_v0  ;;  %4310 = vmatprep.subr.bf16.mxu0 %v4538_v0 }
 0x652   : > { %4235 = vmatmul.mubr.msk.bf16.gmra.mrb[104].mxu1 %vm935_vm5, %v4460_v58  ;;  %4253 = vmatmul.mubr.msk.bf16.gmra.mrb[112].mxu0 %vm935_vm5, %v4461_v38  ;;  %v2527_v58 = vrot.slane %v5353_v54, %v1301_v11 }
 0x653   : > { %4262 = vmatprep.mubr.msk.bf16.mxu1 %vm4540_vm2, %v4538_v0  ;;  %4280 = vmatprep.mubr.msk.bf16.mxu0 %vm4540_vm2, %v4538_v0 }
 0x65a   : > { %4263 = vmatmul.mubr.msk.bf16.vlgmr.msra.gmra.mrb[108].mxu1 %vm935_vm5, %v4462_v41  ;;  %4281 = vmatmul.mubr.msk.bf16.vlgmr.msra.gmra.mrb[116].mxu0 %vm935_vm5, %v4463_v43 }
 0x65b   : > { %4293 = vmatpush3.bf16.msra.mxu1 %v5127_v12  ;;  %4266 = vmatprep.mubr.msk.bf16.mxu1 %vm4540_vm2, %v4538_v0 }
 0x65c   : > { %4294 = vmatprep.subr.bf16.mxu1 %v4538_v0  ;;  %4284 = vmatprep.mubr.msk.bf16.mxu0 %vm4540_vm2, %v4538_v0 }
 0x65d   : > { %4311 = vmatpush3.bf16.msra.mxu0 %v4471_v20 }
 0x65e   : > { %4316 = vmatprep.subr.bf16.mxu0 %v4538_v0 }
 0x65f   : > { %4295 = vmatpush3.bf16.msra.mxu1 %v5133_v56 }
 0x660   : > { %4296 = vmatprep.subr.bf16.mxu1 %v4538_v0 }
 0x662   : > { %4267 = vmatmul.mubr.msk.bf16.gmra.mrb[112].mxu1 %vm935_vm5, %v4464_v44  ;;  %4285 = vmatmul.mubr.msk.bf16.gmra.mrb[120].mxu0 %vm935_vm5, %v4465_v45 }
 0x663   : > { %4297 = vmatpush3.bf16.msra.mxu1 %v5140_v17  ;;  %4270 = vmatprep.mubr.msk.bf16.mxu1 %vm4540_vm2, %v4538_v0 }
 0x664   : > { %4288 = vmatprep.mubr.msk.bf16.mxu0 %vm4540_vm2, %v4538_v0  ;;  %4336 = vmatprep.subr.bf16.mxu1 %v4538_v0 }
 0x66a   : > { %4271 = vmatmul.mubr.msk.bf16.gmra.mrb[116].mxu1 %vm935_vm5, %v4466_v46  ;;  %4289 = vmatmul.mubr.msk.bf16.gmra.mrb[124].mxu0 %vm935_vm5, %v4467_v49 }
 0x66b   : > { %4298 = vmatprep.mubr.msk.bf16.mxu1 %vm4540_vm2, %v4538_v0  ;;  %4312 = vmatprep.mubr.msk.bf16.mxu0 %vm4540_vm2, %v4538_v0 }
 0x672   : > { %4299 = vmatmul.mubr.msk.bf16.vlgmr.msra.gmra.mrb[120].mxu1 %vm935_vm5, %v4468_v50 }
 0x673   : > { %4302 = vmatprep.mubr.msk.bf16.mxu1 %vm4540_vm2, %v4538_v0 }
 0x67a   : > { %4303 = vmatmul.mubr.msk.bf16.gmra.mrb[124].mxu1 %vm935_vm5, %v4469_v51 }
 0x67b   : > { %4306 = vmatprep.mubr.msk.bf16.mxu1 %vm4540_vm2, %v4538_v0 }
 0x682   : > { %4307 = vmatmul.mubr.msk.bf16.gmra.mrb[128].mxu1 %vm935_vm5, %v4470_v33 }
 0x683   : > { %4338 = vmatprep.mubr.msk.bf16.mxu1 %vm4540_vm2, %v4538_v0 }
 0x6e5   : > { %v2208_v57 = vpop.f32.mrb[72].mxu1  ;;  %v2306_v22 = vpop.f32.mrb[80].mxu0 }
 0x6e6   : > { %v2234_v35 = vmul.f32 %v2233_v39, %v2208_v57  ;;  %v2332_v12 = vmul.f32 %v2331_v55, %v2306_v22  ;;  %v4156_v24 = vpop.f32.mrb[73].mxu1  ;;  %v4174_v32 = vpop.f32.mrb[81].mxu0 }
 0x6e7   : > { %v2211_v29 = vpop.f32.mrb[74].mxu1  ;;  %v2309_v48 = vpop.f32.mrb[82].mxu0 }
 0x6e8   : > { %v2337_v34 = vadd.f32 %v2332_v12, %v2234_v35  ;;  %v2235_v40 = vmul.f32 %v2233_v39, %v2211_v29  ;;  %v2333_v62 = vmul.f32 %v2331_v55, %v2309_v48  ;;  %v4157_v47 = vpop.f32.mrb[75].mxu1  ;;  %v4175_v63 = vpop.f32.mrb[83].mxu0 }
 0x6ea   : > { %v2338_v1 = vadd.f32 %v2333_v62, %v2235_v40 }
 0x6ed   : > { %v2216_v7 = vpop.f32.mrb[76].mxu1  ;;  %v2314_v8 = vpop.f32.mrb[84].mxu0 }
 0x6ee   : > { %v2236_v59 = vmul.f32 %v2233_v39, %v2216_v7  ;;  %v2334_v61 = vmul.f32 %v2331_v55, %v2314_v8  ;;  %v4160_v56 = vpop.f32.mrb[77].mxu1  ;;  %v4178_v28 = vpop.f32.mrb[85].mxu0 }
 0x6ef   : > { %v2219_v15 = vpop.f32.mrb[78].mxu1  ;;  %v2317_v42 = vpop.f32.mrb[86].mxu0 }
 0x6f0   : > { %v2339_v9 = vadd.f32 %v2334_v61, %v2236_v59  ;;  %v2237_v16 = vmul.f32 %v2233_v39, %v2219_v15  ;;  %v2335_v17 = vmul.f32 %v2331_v55, %v2317_v42  ;;  %v4161_v36 = vpop.f32.mrb[79].mxu1  ;;  %v4179_v18 = vpop.f32.mrb[87].mxu0 }
 0x6f2   : > { %v2340_v37 = vadd.f32 %v2335_v17, %v2237_v16 }
 0x6f5   : > { %v2224_v19 = vpop.f32.mrb[80].mxu1  ;;  %v2322_v60 = vpop.f32.mrb[88].mxu0 }
 0x6f6   : > { %v2238_v3 = vmul.f32 %v2233_v39, %v2224_v19  ;;  %v2336_v52 = vmul.f32 %v2331_v55, %v2322_v60  ;;  %v4164_v53 = vpop.f32.mrb[81].mxu1  ;;  %v4182_v21 = vpop.f32.mrb[89].mxu0 }
 0x6f7   : > { %v2227_v13 = vpop.f32.mrb[82].mxu1  ;;  %v2325_v23 = vpop.f32.mrb[90].mxu0 }
 0x6f8   : > { %v2341_v14 = vadd.f32 %v2336_v52, %v2238_v3  ;;  %v4165_v25 = vpop.f32.mrb[83].mxu1  ;;  %v4183_v30 = vpop.f32.mrb[91].mxu0 }
 0x6fd   : > { %v2404_v38 = vpop.f32.mrb[84].mxu1  ;;  %v2502_v41 = vpop.f32.mrb[92].mxu0 }
 0x6fe   : > { %v2430_v43 = vmul.f32 %v2429_v31, %v2404_v38  ;;  %v4192_v44 = vpop.f32.mrb[85].mxu1  ;;  %v2528_v45 = vmul.f32 %v2527_v58, %v2502_v41  ;;  %v4210_v46 = vpop.f32.mrb[93].mxu0 }
 0x6ff   : > { %v2407_v49 = vpop.f32.mrb[86].mxu1  ;;  %v2505_v50 = vpop.f32.mrb[94].mxu0 }
 0x700   : > { %v2435_v51 = vadd.f32 %v2430_v43, %v2337_v34  ;;  %v2431_v33 = vmul.f32 %v2429_v31, %v2407_v49  ;;  %v4193_v39 = vpop.f32.mrb[87].mxu1  ;;  %v2529_v55 = vmul.f32 %v2527_v58, %v2505_v50  ;;  %v4211_v57 = vpop.f32.mrb[95].mxu0 }
 0x702   : > { %v2436_v22 = vadd.f32 %v2431_v33, %v2338_v1  ;;  %v2533_v35 = vadd.f32 %v2528_v45, %v2435_v51 }
 0x704   : > { %v2534_v10 = vadd.f32 %v2529_v55, %v2436_v22 }
 0x705   : > { %v2412_v12 = vpop.f32.mrb[88].mxu1  ;;  %v2510_v24 = vpop.f32.mrb[96].mxu0 }
 0x706   : > { %v2432_v32 = vmul.f32 %v2429_v31, %v2412_v12  ;;  %v4196_v11 = vpop.f32.mrb[89].mxu1  ;;  %v2530_v29 = vmul.f32 %v2527_v58, %v2510_v24  ;;  %v4214_v48 = vpop.f32.mrb[97].mxu0 }
 0x707   : > { %v2415_v40 = vpop.f32.mrb[90].mxu1  ;;  %v2513_v62 = vpop.f32.mrb[98].mxu0 }
 0x708   : > { %v2437_v47 = vadd.f32 %v2432_v32, %v2339_v9  ;;  %v2433_v63 = vmul.f32 %v2429_v31, %v2415_v40  ;;  %v4197_v7 = vpop.f32.mrb[91].mxu1  ;;  %v2531_v8 = vmul.f32 %v2527_v58, %v2513_v62  ;;  %v4215_v34 = vpop.f32.mrb[99].mxu0  ;;  %v2625_v9 = vrot.slane %v5353_v54, %v1399_v5 }
 0x70a   : > { %v2438_v59 = vadd.f32 %v2433_v63, %v2340_v37  ;;  %v2535_v61 = vadd.f32 %v2530_v29, %v2437_v47  ;;  %v2723_v37 = vrot.slane %v5353_v54, %v1497_v6 }
 0x70c   : > { %v2536_v56 = vadd.f32 %v2531_v8, %v2438_v59 }
 0x70d   : > { %v2420_v28 = vpop.f32.mrb[92].mxu1  ;;  %v2518_v1 = vpop.f32.mrb[100].mxu0 }
 0x70e   : > { %v2434_v15 = vmul.f32 %v2429_v31, %v2420_v28  ;;  %v4200_v42 = vpop.f32.mrb[93].mxu1  ;;  %v2532_v16 = vmul.f32 %v2527_v58, %v2518_v1  ;;  %v4218_v17 = vpop.f32.mrb[101].mxu0 }
 0x70f   : > { %v2423_v36 = vpop.f32.mrb[94].mxu1  ;;  %v2521_v18 = vpop.f32.mrb[102].mxu0 }
 0x710   : > { %v2439_v19 = vadd.f32 %v2434_v15, %v2341_v14  ;;  %v4201_v60 = vpop.f32.mrb[95].mxu1  ;;  %v4219_v20 = vpop.f32.mrb[103].mxu0 }
 0x712   : > { %v2537_v3 = vadd.f32 %v2532_v16, %v2439_v19 }
 0x715   : > { %v2600_v52 = vpop.f32.mrb[96].mxu1  ;;  %v2698_v53 = vpop.f32.mrb[104].mxu0 }
 0x716   : > { %v2626_v21 = vmul.f32 %v2625_v9, %v2600_v52  ;;  %v4228_v13 = vpop.f32.mrb[97].mxu1  ;;  %v2724_v23 = vmul.f32 %v2723_v37, %v2698_v53  ;;  %v4246_v25 = vpop.f32.mrb[105].mxu0 }
 0x717   : > { %v2603_v30 = vpop.f32.mrb[98].mxu1  ;;  %v2701_v31 = vpop.f32.mrb[106].mxu0 }
 0x718   : > { %v2631_v14 = vadd.f32 %v2626_v21, %v2533_v35  ;;  %v2627_v58 = vmul.f32 %v2625_v9, %v2603_v30  ;;  %v4229_v38 = vpop.f32.mrb[99].mxu1  ;;  %v2725_v41 = vmul.f32 %v2723_v37, %v2701_v31  ;;  %v4247_v43 = vpop.f32.mrb[107].mxu0 }
 0x71a   : > { %v2632_v44 = vadd.f32 %v2627_v58, %v2534_v10  ;;  %v2729_v45 = vadd.f32 %v2724_v23, %v2631_v14 }
 0x71c   : > { %v2730_v5 = vadd.f32 %v2725_v41, %v2632_v44 }
 0x71d   : > { %v2608_v46 = vpop.f32.mrb[100].mxu1  ;;  %v2706_v49 = vpop.f32.mrb[108].mxu0 }
 0x71e   : > { %v2628_v50 = vmul.f32 %v2625_v9, %v2608_v46  ;;  %v4232_v6 = vpop.f32.mrb[101].mxu1  ;;  %v2726_v51 = vmul.f32 %v2723_v37, %v2706_v49  ;;  %v4250_v33 = vpop.f32.mrb[109].mxu0 }
 0x71f   : > { %v2611_v39 = vpop.f32.mrb[102].mxu1  ;;  %v2709_v55 = vpop.f32.mrb[110].mxu0 }
 0x720   : > { %v2633_v57 = vadd.f32 %v2628_v50, %v2535_v61  ;;  %v2629_v22 = vmul.f32 %v2625_v9, %v2611_v39  ;;  %v4233_v12 = vpop.f32.mrb[103].mxu1  ;;  %v2727_v24 = vmul.f32 %v2723_v37, %v2709_v55  ;;  %v4251_v35 = vpop.f32.mrb[111].mxu0  ;;  %v2821_v61 = vrot.slane %v5353_v54, %v1595_v2 }
 0x721   : > { %v3765_v35 = vld [vmem:[%s5515_s15 + $0x8] ss:$0 sm:$0xff] }
 0x722   : > { %v2634_v32 = vadd.f32 %v2629_v22, %v2536_v56  ;;  %v2731_v11 = vadd.f32 %v2726_v51, %v2633_v57  ;;  %v2919_v56 = vrot.slane %v5353_v54, %v1693_v4 }
 0x724   : > { %v2732_v29 = vadd.f32 %v2727_v24, %v2634_v32 }
 0x725   : > { %v2616_v48 = vpop.f32.mrb[104].mxu1  ;;  %v2714_v10 = vpop.f32.mrb[112].mxu0 }
 0x726   : > { %v2630_v40 = vmul.f32 %v2625_v9, %v2616_v48  ;;  %v4236_v62 = vpop.f32.mrb[105].mxu1  ;;  %v2728_v47 = vmul.f32 %v2723_v37, %v2714_v10  ;;  %v4254_v63 = vpop.f32.mrb[113].mxu0  ;;  %v3766_v48 = vld [vmem:[%s5516_s16] ss:$0 sm:$0xff] }
 0x727   : > { %v2619_v7 = vpop.f32.mrb[106].mxu1  ;;  %v2717_v8 = vpop.f32.mrb[114].mxu0 }
 0x728   : > { %v2635_v34 = vadd.f32 %v2630_v40, %v2537_v3  ;;  %v4237_v59 = vpop.f32.mrb[107].mxu1  ;;  %v4255_v28 = vpop.f32.mrb[115].mxu0 }
 0x72a   : > { %v2733_v1 = vadd.f32 %v2728_v47, %v2635_v34 }
 0x72d   : > { %v2796_v15 = vpop.f32.mrb[108].mxu1  ;;  %v2894_v42 = vpop.f32.mrb[116].mxu0 }
 0x72e   : > { %v2822_v16 = vmul.f32 %v2821_v61, %v2796_v15  ;;  %v4264_v17 = vpop.f32.mrb[109].mxu1  ;;  %v2920_v36 = vmul.f32 %v2919_v56, %v2894_v42  ;;  %v4282_v18 = vpop.f32.mrb[117].mxu0 }
 0x72f   : > { %v2799_v19 = vpop.f32.mrb[110].mxu1  ;;  %v2897_v60 = vpop.f32.mrb[118].mxu0 }
 0x730   : > { %v2827_v20 = vadd.f32 %v2822_v16, %v2729_v45  ;;  %v2823_v3 = vmul.f32 %v2821_v61, %v2799_v19  ;;  %v4265_v9 = vpop.f32.mrb[111].mxu1  ;;  %v2921_v37 = vmul.f32 %v2919_v56, %v2897_v60  ;;  %v4283_v52 = vpop.f32.mrb[119].mxu0 }
 0x732   : > { %v2828_v53 = vadd.f32 %v2823_v3, %v2730_v5  ;;  %v2925_v21 = vadd.f32 %v2920_v36, %v2827_v20 }
 0x734   : > { %v2926_v2 = vadd.f32 %v2921_v37, %v2828_v53 }
 0x735   : > { %v2804_v13 = vpop.f32.mrb[112].mxu1  ;;  %v2902_v26 = vpop.f32.mrb[120].mxu0 }
 0x736   : > { %v2824_v23 = vmul.f32 %v2821_v61, %v2804_v13  ;;  %v4268_v4 = vpop.f32.mrb[113].mxu1  ;;  %v2922_v54 = vmul.f32 %v2919_v56, %v2902_v26  ;;  %v4286_v25 = vpop.f32.mrb[121].mxu0 }
 0x737   : > { %v2807_v30 = vpop.f32.mrb[114].mxu1  ;;  %v2905_v31 = vpop.f32.mrb[122].mxu0 }
 0x738   : > { %v2829_v14 = vadd.f32 %v2824_v23, %v2731_v11  ;;  %v2825_v58 = vmul.f32 %v2821_v61, %v2807_v30  ;;  %v4269_v38 = vpop.f32.mrb[115].mxu1  ;;  %v2923_v41 = vmul.f32 %v2919_v56, %v2905_v31  ;;  %v4287_v43 = vpop.f32.mrb[123].mxu0 }
 0x73a   : > { %v2830_v44 = vadd.f32 %v2825_v58, %v2732_v29  ;;  %v2927_v45 = vadd.f32 %v2922_v54, %v2829_v14 }
 0x73c   : > { %v2928_v46 = vadd.f32 %v2923_v41, %v2830_v44 }
 0x73d   : > { %v2812_v49 = vpop.f32.mrb[116].mxu1  ;;  %v2910_v5 = vpop.f32.mrb[124].mxu0 }
 0x73e   : > { %v2826_v50 = vmul.f32 %v2821_v61, %v2812_v49  ;;  %v4272_v6 = vpop.f32.mrb[117].mxu1  ;;  %v2924_v51 = vmul.f32 %v2919_v56, %v2910_v5  ;;  %v4290_v33 = vpop.f32.mrb[125].mxu0 }
 0x73f   : > { %v2815_v39 = vpop.f32.mrb[118].mxu1  ;;  %v2913_v55 = vpop.f32.mrb[126].mxu0 }
 0x740   : > { %v2831_v57 = vadd.f32 %v2826_v50, %v2733_v1  ;;  %v4273_v22 = vpop.f32.mrb[119].mxu1  ;;  %v4291_v12 = vpop.f32.mrb[127].mxu0 }
 0x742   : > { %v2929_v24 = vadd.f32 %v2924_v51, %v2831_v57 }
 0x745   : > { %v2992_v32 = vpop.f32.mrb[120].mxu1 }
 0x746   : > { %v3018_v11 = vmul.f32 %v3765_v35, %v2992_v32  ;;  %v4300_v29 = vpop.f32.mrb[121].mxu1 }
 0x747   : > { %v2995_v10 = vpop.f32.mrb[122].mxu1 }
 0x748   : > { %v3023_v40 = vadd.f32 %v3018_v11, %v2925_v21  ;;  %v3019_v62 = vmul.f32 %v3765_v35, %v2995_v10  ;;  %v4301_v47 = vpop.f32.mrb[123].mxu1 }
 0x74a   : > { %v3034_v63 = vadd.f32 %v3766_v48, %v3023_v40  ;;  %v3024_v7 = vadd.f32 %v3019_v62, %v2926_v2 }
 0x74c   : > { %v3039_v8 = vadd.f32 3.0, %v3034_v63  ;;  %v3035_v34 = vadd.f32 %v3766_v48, %v3024_v7 }
 0x74d   : > { %v3000_v59 = vpop.f32.mrb[124].mxu1 }
 0x74e   : > { %v3040_v28 = vadd.f32 3.0, %v3035_v34  ;;  %v3020_v1 = vmul.f32 %v3765_v35, %v3000_v59  ;;  %v4304_v61 = vpop.f32.mrb[125].mxu1  ;;  %v3044_v56 = vmax.f32 %v3039_v8, 0.0  ;;  %v3066_v8 = vld [vmem:[%s5518_s18] sm:$0x1] }
 0x74f   : > { %v3003_v15 = vpop.f32.mrb[126].mxu1 }
 0x750   : > { %v3045_v42 = vmax.f32 %v3040_v28, 0.0  ;;  %v3025_v16 = vadd.f32 %v3020_v1, %v2927_v45  ;;  %v3021_v17 = vmul.f32 %v3765_v35, %v3003_v15  ;;  %v4305_v36 = vpop.f32.mrb[127].mxu1  ;;  %v3049_v20 = vmin.f32 %v3044_v56, 6.0 }
 0x752   : > { %v3050_v18 = vmin.f32 %v3045_v42, 6.0  ;;  %v3036_v19 = vadd.f32 %v3766_v48, %v3025_v16  ;;  %v3026_v60 = vadd.f32 %v3021_v17, %v2928_v46  ;;  %v3054_v13 = vmul.f32 %v3049_v20, %v3034_v63  ;;  %v3067_v63 = vld [vmem:[%s5519_s19] sm:$0xf] }
 0x753   : > { %v3143_v7 = vsel %vm823_vm0, %v3067_v63, 0  ;;  %v4472_v42 = vld [vmem:[%s5521_s21] sm:$0xff]  }
 0x754   : > { %v3041_v3 = vadd.f32 3.0, %v3036_v19  ;;  %v3037_v9 = vadd.f32 %v3766_v48, %v3026_v60  ;;  %v3055_v37 = vmul.f32 %v3050_v18, %v3035_v34  ;;  %v3059_v38 = vmul.f32 0.16666667, %v3054_v13  ;;  %v4473_v16 = vld [vmem:[%s5523_s23] sm:$0xff]  }
 0x755   : > { %v3008_v52 = vpop.f32.mrb[128].mxu1  ;;  %4337 = vmatpush3.bf16.msra.mxu1 %v4473_v16  ;;  %v3068_v17 = vld [vmem:[%s5520_s20] sm:$0x1] }
 0x756   : > { %v3046_v53 = vmax.f32 %v3041_v3, 0.0  ;;  %v3042_v21 = vadd.f32 3.0, %v3037_v9  ;;  %v4308_v2 = vpop.f32.mrb[129].mxu1  ;;  %v3022_v26 = vmul.f32 %v3765_v35, %v3008_v52  ;;  %v5388_v30 = vmul.f32 0.16666667, %v3055_v37 }
 0x757   : > { %v3011_v23 = vpop.f32.mrb[130].mxu1  ;;  %v3070_v49 = vsel %vm3069_vm8, %v3059_v38, 0.0 }
 0x758   : > { %v3051_v4 = vmin.f32 %v3046_v53, 6.0  ;;  %v3047_v54 = vmax.f32 %v3042_v21, 0.0  ;;  %v4309_v25 = vpop.f32.mrb[131].mxu1  ;;  %v3027_v31 = vadd.f32 %v3022_v26, %v2929_v24  ;;  %v3071_v45 = vsel %vm3069_vm8, %v5388_v30, 0.0 }
 0x759   : > { %v3072_v51 = vadd.f32 %v3071_v45, %v3070_v49 }
 0x75a   : > { %v3056_v14 = vmul.f32 %v3051_v4, %v3036_v19  ;;  %v3052_v58 = vmin.f32 %v3047_v54, 6.0  ;;  %v3038_v41 = vadd.f32 %v3766_v48, %v3027_v31 }
 0x75c   : > { %v3061_v43 = vmul.f32 0.16666667, %v3056_v14  ;;  %v3057_v44 = vmul.f32 %v3052_v58, %v3037_v9  ;;  %v3043_v46 = vadd.f32 3.0, %v3038_v41 }
 0x75e   : > { %v3073_v5 = vsel %vm3069_vm8, %v3061_v43, 0.0  ;;  %v3062_v50 = vmul.f32 0.16666667, %v3057_v44  ;;  %v3048_v6 = vmax.f32 %v3043_v46, 0.0 }
 0x75f   : > { %v3074_v39 = vadd.f32 %v3073_v5, %v3072_v51 }
 0x760   : > { %v3053_v33 = vmin.f32 %v3048_v6, 6.0  ;;  %v3075_v55 = vsel %vm3069_vm8, %v3062_v50, 0.0 }
 0x761   : > { %v3076_v12 = vadd.f32 %v3075_v55, %v3074_v39 }
 0x762   : > { %v3058_v57 = vmul.f32 %v3053_v33, %v3038_v41 }
 0x764   : > { %v3063_v22 = vmul.f32 0.16666667, %v3058_v57 }
 0x766   : > { %v3078_v24 = vsel %vm3077_vm9, %v3063_v22, 0.0 }
 0x767   : > { %v3079_v35 = vadd.f32 %v3078_v24, %v3076_v12  ;;  %v3389_v12 = vld [vmem:[%s5525_s25] sm:$0xff] }
 0x768   : > { %v3775_v24 = vld [vmem:[%s5524_s24] ss:$0 sm:$0xff] }
 0x769   : > { %v3080_v32 = vrot.slane %v3079_v35, 4 }
 0x76b   : > { %v3081_v11 = vadd.f32 %v3080_v32, %v3079_v35 }
 0x76d   : > { %v3082_v29 = vrot.slane %v3081_v11, 2 }
 0x76f   : > { %v3083_v48 = vadd.f32 %v3082_v29, %v3081_v11 }
 0x771   : > { %v3084_v10 = vrot.slane %v3083_v48, 1 }
 0x773   : > { %v3085_v40 = vadd.f32 %v3084_v10, %v3083_v48 }
 0x775   : > { %v3086_v62 = vmul.f32 0.027777778, %v3085_v40 }
 0x777   : > { %v3087_v47 = vpack.c.bf16 %v3086_v62, %v3086_v62 }
 0x779   : > { %4313 = vmatmul.mubr.msk.bf16.vlgmr.msra.gmra.mrb[128].mxu0 %vm3069_vm8, %v3087_v47 }
 0x77a   : > { %4318 = vmatprep.mubr.msk.bf16.mxu0 %vm4540_vm2, %v4538_v0  ;;  %4317 = vmatpush3.bf16.msra.mxu0 %v3143_v7 }
 0x77b   : > { %4322 = vmatprep.subr.bf16.mxu0 %v4538_v0 }
 0x84c   : > { %v3131_v34 = vpop.f32.mrb[128].mxu0 }
 0x84d   : > { %v3132_v59 = vadd.f32 %v3131_v34, %v3066_v8  ;;  %v4314_v28 = vpop.f32.mrb[129].mxu0 }
 0x84e   : > { %v3134_v1 = vpop.f32.mrb[130].mxu0 }
 0x84f   : > { %v3137_v61 = vmax.f32 %v3132_v59, 0.0  ;;  %v4315_v56 = vpop.f32.mrb[131].mxu0 }
 0x851   : > { %v3138_v15 = vpack.c.bf16 %v3137_v61, %v3137_v61 }
 0x853   : > { %4319 = vmatmul.mubr.msk.bf16.vlgmr.msra.gmra.mrb[132].mxu0 %vm1823_vm6, %v3138_v15 }
 0x854   : > { %4324 = vmatprep.mubr.msk.bf16.mxu0 %vm4540_vm2, %v4538_v0  ;;  %4323 = vmatpush3.bf16.msra.mxu0 %v4472_v42 }
 0x926   : > { %v3179_v36 = vpop.f32.mrb[132].mxu0 }
 0x927   : > { %v3180_v18 = vadd.f32 %v3179_v36, %v3068_v17  ;;  %v4320_v19 = vpop.f32.mrb[133].mxu0 }
 0x928   : > { %v3182_v60 = vpop.f32.mrb[134].mxu0 }
 0x929   : > { %v3185_v20 = vadd.f32 3.0, %v3180_v18  ;;  %v4321_v3 = vpop.f32.mrb[135].mxu0 }
 0x92b   : > { %v3186_v9 = vmax.f32 %v3185_v20, 0.0 }
 0x92d   : > { %v3187_v37 = vmin.f32 %v3186_v9, 6.0 }
 0x92f   : > { %v3188_v52 = vmul.f32 0.16666667, %v3187_v37 }
 0x931   : > { %v3192_v53 = vrot.slane %v3188_v52, %v4994_v27  ;;  %v3770_v27 = vld [vmem:[%s5522_s22] ss:$0 sm:$0xff] }
 0x933   : > { %v3193_v21 = vmul.f32 %v3192_v53, %v3059_v38  ;;  %v3194_v2 = vmul.f32 %v3192_v53, %v5388_v30  ;;  %v3195_v26 = vmul.f32 %v3192_v53, %v3061_v43  ;;  %v3196_v23 = vmul.f32 %v3192_v53, %v3062_v50 }
 0x934   : > { %v3197_v54 = vmul.f32 %v3192_v53, %v3063_v22 }
 0x935   : > { %v3201_v13 = vpack.c.bf16 %v3194_v2, %v3193_v21  ;;  %v3202_v4 = vpack.c.bf16 %v3196_v23, %v3195_v26 }
 0x936   : > { %v3203_v25 = vpack.c.bf16 %v3197_v54, %v3197_v54 }
 0x937   : > { %4325 = vmatmul.mubr.msk.bf16.vlgmr.msra.gmra.mrb[136].mxu0 %vm3069_vm8, %v3201_v13 }
 0x938   : > { %4328 = vmatprep.mubr.msk.bf16.mxu0 %vm4540_vm2, %v4538_v0 }
 0x93f   : > { %4329 = vmatmul.mubr.msk.bf16.gmra.mrb[140].mxu0 %vm3069_vm8, %v3202_v4 }
 0x940   : > { %4332 = vmatprep.mubr.msk.bf16.mxu0 %vm4540_vm2, %v4538_v0 }
 0x947   : > { %4333 = vmatmul.mubr.msk.bf16.gmra.mrb[144].mxu0 %vm3069_vm8, %v3203_v25 }
 0x948   : > { %4360 = vmatprep.mubr.msk.f32.mxu0 %vm935_vm5, %v3389_v12 }
 0xa0a   : > { %v3259_v30 = vpop.f32.mrb[136].mxu0 }
 0xa0b   : > { %v4326_v31 = vpop.f32.mrb[137].mxu0  ;;  %v3260_v58 = vadd.f32 %v3770_v27, %v3259_v30 }
 0xa0c   : > { %v3262_v14 = vpop.f32.mrb[138].mxu0 }
 0xa0d   : > { %v3263_v38 = vadd.f32 %v3770_v27, %v3262_v14  ;;  %v4327_v41 = vpop.f32.mrb[139].mxu0  ;;  %v3390_v14 = vld [vmem:[%s5525_s25 + $0x8] sm:$0xff] }
 0xa0f   : > { %v3284_v43 = vpack.c.bf16 %v3263_v38, %v3260_v58 }
 0xa11   : > { %4339 = vmatmul.mubr.msk.bf16.vlgmr.msra.gmra.mrb[132].mxu1 %vm3069_vm8, %v3284_v43 }
 0xa12   : > { %v3267_v44 = vpop.f32.mrb[140].mxu0  ;;  %4342 = vmatprep.mubr.msk.bf16.mxu1 %vm4540_vm2, %v4538_v0 }
 0xa13   : > { %v4330_v45 = vpop.f32.mrb[141].mxu0  ;;  %v3268_v49 = vadd.f32 %v3770_v27, %v3267_v44 }
 0xa14   : > { %v3270_v46 = vpop.f32.mrb[142].mxu0 }
 0xa15   : > { %v3271_v5 = vadd.f32 %v3770_v27, %v3270_v46  ;;  %v4331_v50 = vpop.f32.mrb[143].mxu0 }
 0xa17   : > { %v3285_v6 = vpack.c.bf16 %v3271_v5, %v3268_v49 }
 0xa19   : > { %4343 = vmatmul.mubr.msk.bf16.gmra.mrb[136].mxu1 %vm3069_vm8, %v3285_v6 }
 0xa1a   : > { %v3275_v51 = vpop.f32.mrb[144].mxu0  ;;  %4346 = vmatprep.mubr.msk.bf16.mxu1 %vm4540_vm2, %v4538_v0 }
 0xa1b   : > { %v3276_v33 = vadd.f32 %v3770_v27, %v3275_v51  ;;  %v4334_v39 = vpop.f32.mrb[145].mxu0 }
 0xa1c   : > { %v3278_v55 = vpop.f32.mrb[146].mxu0 }
 0xa1d   : > { %v4335_v57 = vpop.f32.mrb[147].mxu0  ;;  %v3286_v22 = vpack.c.bf16 %v3276_v33, %v3276_v33 }
 0xa21   : > { %4347 = vmatmul.mubr.msk.bf16.gmra.mrb[140].mxu1 %vm3069_vm8, %v3286_v22 }
 0xae4   : > { %v3342_v35 = vpop.f32.mrb[132].mxu1 }
 0xae5   : > { %v3343_v32 = vadd.f32 %v3775_v24, %v3342_v35  ;;  %v4340_v0 = vpop.f32.mrb[133].mxu1 }
 0xae6   : > { %v3345_v11 = vpop.f32.mrb[134].mxu1 }
 0xae7   : > { %v3364_v29 = vadd.f32 3.0, %v3343_v32  ;;  %v3346_v48 = vadd.f32 %v3775_v24, %v3345_v11  ;;  %v4341_v10 = vpop.f32.mrb[135].mxu1 }
 0xae9   : > { %v3369_v40 = vmax.f32 %v3364_v29, 0.0  ;;  %v3365_v62 = vadd.f32 3.0, %v3346_v48 }
 0xaeb   : > { %v3374_v47 = vmin.f32 %v3369_v40, 6.0  ;;  %v3370_v63 = vmax.f32 %v3365_v62, 0.0 }
 0xaec   : > { %v3350_v7 = vpop.f32.mrb[136].mxu1 }
 0xaed   : > { %v3379_v8 = vmul.f32 %v3374_v47, %v3343_v32  ;;  %v3375_v34 = vmin.f32 %v3370_v63, 6.0  ;;  %v3351_v59 = vadd.f32 %v3775_v24, %v3350_v7  ;;  %v4344_v28 = vpop.f32.mrb[137].mxu1 }
 0xaee   : > { %v3353_v1 = vpop.f32.mrb[138].mxu1 }
 0xaef   : > { %v3380_v61 = vmul.f32 %v3375_v34, %v3346_v48  ;;  %v3366_v56 = vadd.f32 3.0, %v3351_v59  ;;  %v3354_v15 = vadd.f32 %v3775_v24, %v3353_v1  ;;  %v4345_v42 = vpop.f32.mrb[139].mxu1  ;;  %v3384_v16 = vmul.f32 0.16666667, %v3379_v8 }
 0xaf1   : > { %v3385_v17 = vmul.f32 0.16666667, %v3380_v61  ;;  %v3371_v36 = vmax.f32 %v3366_v56, 0.0  ;;  %v3367_v18 = vadd.f32 3.0, %v3354_v15 }
 0xaf3   : > { %v3376_v19 = vmin.f32 %v3371_v36, 6.0  ;;  %v3372_v60 = vmax.f32 %v3367_v18, 0.0  ;;  %v4363_v20 = vpack.c.bf16 %v3385_v17, %v3384_v16 }
 0xaf4   : > { %v3358_v3 = vpop.f32.mrb[140].mxu1 }
 0xaf5   : > { %v3381_v9 = vmul.f32 %v3376_v19, %v3351_v59  ;;  %v3377_v37 = vmin.f32 %v3372_v60, 6.0  ;;  %v3359_v52 = vadd.f32 %v3775_v24, %v3358_v3  ;;  %v4348_v53 = vpop.f32.mrb[141].mxu1  ;;  %4364 = vmatprep.subr.bf16.mxu0 %v4363_v20 }
 0xaf6   : > { %v3361_v21 = vpop.f32.mrb[142].mxu1  ;;  %4366 = vmatpush3.bf16.msra.mxu0 %v4363_v20 }
 0xaf7   : > { %v3382_v2 = vmul.f32 %v3377_v37, %v3354_v15  ;;  %v3368_v13 = vadd.f32 3.0, %v3359_v52  ;;  %v4349_v26 = vpop.f32.mrb[143].mxu1  ;;  %v3386_v23 = vmul.f32 0.16666667, %v3381_v9 }
 0xaf9   : > { %v3387_v4 = vmul.f32 0.16666667, %v3382_v2  ;;  %v3373_v54 = vmax.f32 %v3368_v13, 0.0 }
 0xafb   : > { %v3378_v25 = vmin.f32 %v3373_v54, 6.0  ;;  %v4367_v27 = vpack.c.bf16 %v3387_v4, %v3386_v23 }
 0xafd   : > { %v3383_v30 = vmul.f32 %v3378_v25, %v3359_v52  ;;  %4368 = vmatprep.subr.bf16.mxu0 %v4367_v27 }
 0xafe   : > { %4370 = vmatpush3.bf16.msra.mxu0 %v4367_v27 }
 0xaff   : > { %v3388_v31 = vmul.f32 0.16666667, %v3383_v30 }
 0xb01   : > { %4358 = vmatprep.subr.msk.mxu0 %vm823_vm0, %v3388_v31 }
 0xb02   : > { %4359 = vmatpush3.msk.msra.mxu0 %vm823_vm0, %v3388_v31 }
 0xb03   : > { %4361 = vmatmul.mubr.msk.f32.vlgmr.msra.gmra.mrb[148].mxu0 %vm935_vm5, %v3390_v14 }
 0xbd6   : > { %v4362_v58 = vpop.f32.mrb[148].mxu0 }
 0xbd7   : > { %3477 = vst.msk [vmem:[%s784_s30 + $0x8] sm:$0xff] %vm3475_vm10, %v4362_v58  ;;  %v3466_v38 = vpop.f32.mrb[149].mxu0 }
 0xbd8   : > { %3476 = vst.msk [vmem:[%s784_s30] sm:$0xff] %vm3475_vm10, %v3466_v38 }
 0xbd9   : > { %4487 = shalt.err (!%p4484_p3)
}
 0xbda   : > { %s4488_s12 = scalar_lea.hbm %s5457_s6, 256  ;;  %s4492_s30 = scalar_lea.hbm %s5526_s26, 512 }
 0xbdb   : > { %p4489_p4 = scmp.ne.s32.totalorder %s5457_s6, %s4488_s12  ;;  %p4493_p9 = scmp.lt.u32.totalorder %s5457_s6, %s5526_s26 }
 0xbdc   : > { %p4494_p10 = scmp.lt.u32.totalorder %s4492_s30, %s4488_s12  ;;  %p4496_p12 = scmp.lt.u32.totalorder %s4488_s12, %s5457_s6 }
 0xbdd   : > { %p4490_p7 = pnand %p4489_p4, %p4717_p5 }
 0xbde   : > { %p4495_p11 = por %p4494_p10, %p4493_p9 }
 0xbdf   : > { %p4491_p8 = pneg %p4490_p7 }
 0xbe0   : > { %p4497_p13 = por %p4496_p12, %p4495_p11 }
 0xbe2   : > { %p4498_p0 = pnand %p4497_p13, %p4491_p8 }
 0xbe4   : > { %4501 = shalt.err (!%p4498_p0)
}
 0xbe5   : > { %s4542_s0 = smov 128   ;;  %s4543_s11 = smov 8  }
 0xbe6   : > { %4372 = dma.vmem_to_hbm [thread:$0]  (%p4717_p5), %s5452_s10, 256, %s5457_s6, %s5459_s4, %s4542_s0, %s4542_s0, %s4543_s11  }
 0xbe7 PF: > { %p4378_p1 = scmp.ge.s32.totalorder %s4536_s28, 2  ;;  %s3507_s1 = sand.u32 1, %s4524_s27  }
 0xbe8   : > { %s3508_s12 = scalar_lea.sflag [#allocation3], %s3507_s1 }
 0xbe9   : > { %p4375_p2 = pnand %p4378_p1, %p4721_p6 }
 0xbeb   : > { %4519 = dma.done.wait (!%p4375_p2), %s3508_s12, 256  }
 0xbec   : > { %4521 = vsyncadd (!%p4375_p2), %s3508_s12, 4294967040  ;;  %s5562_s9 = sld [smem:[#allocation5_spill]]  ;;  %p36_p3 = scmp.ge.s32.totalorder %s4704_s29, 4  }
 0xbed   : > { %s5563_s27 = smov %s4528_s3  ;;  %s5564_s3 = smov %s4532_s7 }
 0xbee   : > { %s5566_s28 = smov %s4704_s29  ;;  %38 = sbr.rel (!%p36_p3) target bundleno = 18 (0x12), region = 175 }
 0xbf2   : > { %s5565_s7 = smov %s5562_s9 }
 0xbf5   :  { %3513 = vsyncpa [#allocation3], 1 }
 0xbf6   :  { %3515 = vsyncpa [#allocation3 + $0x1], 1 }

</bundles_post_ra>
